<compile_context>
chip_gen: v6e
topology: v6e:2x2x1
jax: 0.10.0
libtpu: 0.0.40
codegen_flags: <defaults>
</compile_context>

<pallas_src>
import jax
import jax.numpy as jnp
from jax import lax
from jax.experimental import pallas as pl
from jax.experimental.pallas import tpu as pltpu

_EPS = 1e-5
_LANE = 128


def _round_up(v, m):
    return (v + m - 1) // m * m


# ---------------------------------------------------------------------------
# pass 1: fused 2x2 max-pool + conv1 (+bias); per-block BN1 partial stats
# ---------------------------------------------------------------------------
def _pool_conv1_kernel(xc_ref, xt_ref, xb_ref, w_ref, b_ref, y_ref, s_ref, xs_ref):
    # xc_ref : [1, HB, 2, PW, 2*Cin] f32  centre row block (pool taps exposed by
    #          a free wrapper reshape: dim 2 = H parity, lane halves = W parity)
    # xt/xb  : [1, 1, 2, PW, 2*Cin] f32   one-row halo above / below
    # w_ref  : [9, Cin, Cm] bf16          b_ref : [1, Cm] f32
    # y_ref  : [1, HB, PW, Cm] bf16       s_ref : [1, 1, 2, Cm] f32 (sum, sumsq)
    # xs_ref : [HB+2, PW+2, Cin] f32 VMEM scratch (zero-padded halo tile)
    _, hb, _, pw, c2 = xc_ref.shape
    cin = c2 // 2
    cm = w_ref.shape[-1]
    j = pl.program_id(1)
    nrb = pl.num_programs(1)

    def pool(v):                                           # v: [r, 2, PW, 2*Cin]
        m = jnp.maximum(v[:, 0], v[:, 1])                  # H-parity max
        return jnp.maximum(m[..., :cin], m[..., cin:])     # W-parity max

    # Build the zero-padded activation tile in VMEM scratch (no concatenates).
    xs_ref[...] = jnp.zeros(xs_ref.shape, xs_ref.dtype)
    xs_ref[1:hb + 1, 1:pw + 1, :] = pool(xc_ref[0])

    @pl.when(j > 0)
    def _():
        xs_ref[0:1, 1:pw + 1, :] = pool(xt_ref[0])

    @pl.when(j < nrb - 1)
    def _():
        xs_ref[hb + 1:hb + 2, 1:pw + 1, :] = pool(xb_ref[0])

    # 3x3 conv as 9 shifted matmuls (bf16 operands, f32 accumulation).
    p = hb * pw
    acc = jnp.zeros((p, cm), jnp.float32)
    for k in range(9):
        dy, dx = k // 3, k % 3
        lhs = xs_ref[dy:dy + hb, dx:dx + pw, :].reshape(p, cin)
        acc = acc + jnp.dot(lhs.astype(jnp.bfloat16), w_ref[k],
                            preferred_element_type=jnp.float32)
    acc = acc + b_ref[...]

    # Per-block BN partial statistics on the MXU (ones @ acc), not an XLU reduce.
    ones = jnp.ones((1, p), jnp.float32)
    ssum = jnp.dot(ones, acc, preferred_element_type=jnp.float32)
    ssq = jnp.dot(ones, acc * acc, preferred_element_type=jnp.float32)
    s_ref[0, 0] = jnp.concatenate([ssum, ssq], axis=0)

    y_ref[0] = acc.reshape(hb, pw, cm).astype(y_ref.dtype)


# ---------------------------------------------------------------------------
# pass 2: BN1 (folded affine) + ReLU + conv2 (+bias); per-block BN2 partials
# ---------------------------------------------------------------------------
def _bn1_relu_conv2_kernel(yc_ref, yt_ref, yb_ref, sc_ref, sh_ref, w_ref, b_ref,
                           y2_ref, s2_ref, xs_ref):
    # yc_ref : [1, HB, PW, Cm] bf16   yt/yb: [1, 1, PW, Cm] bf16 (row halos)
    # sc/sh  : [1, Cm] f32 (folded BN1 affine)
    # w_ref  : [9, Cm, Co] bf16       b_ref : [1, Co] f32
    # y2_ref : [1, HB, PW, Co] bf16   s2_ref: [1, 1, 2, Co] f32
    # xs_ref : [HB+2, PW+2, Cm] f32 VMEM scratch
    _, hb, pw, cm = yc_ref.shape
    co = w_ref.shape[-1]
    j = pl.program_id(1)
    nrb = pl.num_programs(1)

    def bn_relu(v):                                        # bf16 in, f32 math
        return jnp.maximum(v.astype(jnp.float32) * sc_ref[...] + sh_ref[...], 0.0)

    xs_ref[...] = jnp.zeros(xs_ref.shape, xs_ref.dtype)
    xs_ref[1:hb + 1, 1:pw + 1, :] = bn_relu(yc_ref[0])

    @pl.when(j > 0)
    def _():
        xs_ref[0:1, 1:pw + 1, :] = bn_relu(yt_ref[0])

    @pl.when(j < nrb - 1)
    def _():
        xs_ref[hb + 1:hb + 2, 1:pw + 1, :] = bn_relu(yb_ref[0])

    p = hb * pw
    acc = jnp.zeros((p, co), jnp.float32)
    for k in range(9):
        dy, dx = k // 3, k % 3
        lhs = xs_ref[dy:dy + hb, dx:dx + pw, :].reshape(p, cm)
        acc = acc + jnp.dot(lhs.astype(jnp.bfloat16), w_ref[k],
                            preferred_element_type=jnp.float32)
    acc = acc + b_ref[...]

    ones = jnp.ones((1, p), jnp.float32)
    ssum = jnp.dot(ones, acc, preferred_element_type=jnp.float32)
    ssq = jnp.dot(ones, acc * acc, preferred_element_type=jnp.float32)
    s2_ref[0, 0] = jnp.concatenate([ssum, ssq], axis=0)

    y2_ref[0] = acc.reshape(hb, pw, co).astype(y2_ref.dtype)


# ---------------------------------------------------------------------------
# pass 3: BN2 (folded affine) + ReLU, in place on y2
# ---------------------------------------------------------------------------
def _bn2_relu_kernel(y2_ref, sc_ref, sh_ref, o_ref):
    v = y2_ref[0].astype(jnp.float32) * sc_ref[...] + sh_ref[...]
    o_ref[0] = jnp.maximum(v, 0.0).astype(o_ref.dtype)


# ---------------------------------------------------------------------------
# wrapper
# ---------------------------------------------------------------------------
def _fold_bn(stats, gamma_p, beta_p, count):
    """Per-(sample,row-block) (sum, sumsq) partials -> folded BN (scale, shift)."""
    tot = jnp.sum(stats, axis=(0, 1))                      # [2, Cpad]
    mean = tot[0] / count
    # TODO(synk): E[x^2]-E[x]^2 is cancellation-prone when |mean| >> std; use a
    #             two-pass / Welford form if activations can have large means.
    var = jnp.maximum(tot[1] / count - mean * mean, 0.0)   # biased variance
    scale = gamma_p * lax.rsqrt(var + _EPS)
    return scale, beta_p - mean * scale


def down_forward_nhwc(x, params, row_block=None):
    """`Down` forward: 2x2 max-pool -> DoubleConv.  x: [N, H, W, Cin] NHWC f32.

    Returns [N, H/2, W/2, Cout] in bfloat16 (bf16 output per perf review).
    """
    w1, b1, g1, be1, w2, b2, g2, be2 = params
    n, hh, ww, cin = x.shape
    assert hh % 2 == 0 and ww % 2 == 0
    ph, pw = hh // 2, ww // 2
    cmid, cout = w1.shape[-1], w2.shape[-1]
    cmid_p, cout_p = _round_up(cmid, _LANE), _round_up(cout, _LANE)
    dm, do = cmid_p - cmid, cout_p - cout

    if row_block is None:
        row_block = ph if ph <= 8 else next(c for c in (8, 4, 2, 1) if ph % c == 0)
    hb = row_block
    assert ph % hb == 0, "pooled height must be divisible by row_block"
    nrb = ph // hb
    cnt = n * ph * pw

    # One-time parameter prep: channel dims padded to x128 (lane-dense stores,
    # full MXU N); conv weights reshaped [3,3,Ci,Co] -> [9,Ci,Co] bf16.
    w1p = jnp.pad(w1, ((0, 0), (0, 0), (0, 0), (0, dm))
                  ).reshape(9, cin, cmid_p).astype(jnp.bfloat16)
    w2p = jnp.pad(w2, ((0, 0), (0, 0), (0, dm), (0, do))
                  ).reshape(9, cmid_p, cout_p).astype(jnp.bfloat16)
    b1p = jnp.pad(b1, (0, dm)).reshape(1, cmid_p)
    b2p = jnp.pad(b2, (0, do)).reshape(1, cout_p)
    g1p, be1p = jnp.pad(g1, (0, dm)), jnp.pad(be1, (0, dm))
    g2p, be2p = jnp.pad(g2, (0, do)), jnp.pad(be2, (0, do))

    # Free row-major reshape exposing the 2x2 pool taps (no extra HBM pass).
    x_r = x.reshape(n, ph, 2, pw, 2 * cin)

    cparams = pltpu.CompilerParams(
        dimension_semantics=("parallel", "parallel"),
        vmem_limit_bytes=48 * 1024 * 1024)

    # Halo index maps: block size 1 along rows => block index == row index.
    def center5(i, j): return (i, j, 0, 0, 0)
    def top5(i, j): return (i, jnp.maximum(j * hb - 1, 0), 0, 0, 0)
    def bot5(i, j): return (i, jnp.minimum((j + 1) * hb, ph - 1), 0, 0, 0)

    def center4(i, j): return (i, j, 0, 0)
    def top4(i, j): return (i, jnp.maximum(j * hb - 1, 0), 0, 0)
    def bot4(i, j): return (i, jnp.minimum((j + 1) * hb, ph - 1), 0, 0)

    # ---- pass 1: fused max-pool + conv1 ----
    y1, s1 = pl.pallas_call(
        _pool_conv1_kernel,
        grid=(n, nrb),
        in_specs=[
            pl.BlockSpec((1, hb, 2, pw, 2 * cin), center5),
            pl.BlockSpec((1, 1, 2, pw, 2 * cin), top5),
            pl.BlockSpec((1, 1, 2, pw, 2 * cin), bot5),
            pl.BlockSpec((9, cin, cmid_p), lambda i, j: (0, 0, 0)),
            pl.BlockSpec((1, cmid_p), lambda i, j: (0, 0)),
        ],
        out_specs=(
            pl.BlockSpec((1, hb, pw, cmid_p), lambda i, j: (i, j, 0, 0)),
            pl.BlockSpec((1, 1, 2, cmid_p), lambda i, j: (i, j, 0, 0)),
        ),
        out_shape=(
            jax.ShapeDtypeStruct((n, ph, pw, cmid_p), jnp.bfloat16),
            jax.ShapeDtypeStruct((n, nrb, 2, cmid_p), jnp.float32),
        ),
        scratch_shapes=[pltpu.VMEM((hb + 2, pw + 2, cin), jnp.float32)],
        compiler_params=cparams,
    )(x_r, x_r, x_r, w1p, b1p)

    sc1, sh1 = _fold_bn(s1, g1p, be1p, cnt)                # O(C) wrapper math

    # ---- pass 2: BN1 + ReLU + conv2 ----
    y2, s2 = pl.pallas_call(
        _bn1_relu_conv2_kernel,
        grid=(n, nrb),
        in_specs=[
            pl.BlockSpec((1, hb, pw, cmid_p), center4),
            pl.BlockSpec((1, 1, pw, cmid_p), top4),
            pl.BlockSpec((1, 1, pw, cmid_p), bot4),
            pl.BlockSpec((1, cmid_p), lambda i, j: (0, 0)),
            pl.BlockSpec((1, cmid_p), lambda i, j: (0, 0)),
            pl.BlockSpec((9, cmid_p, cout_p), lambda i, j: (0, 0, 0)),
            pl.BlockSpec((1, cout_p), lambda i, j: (0, 0)),
        ],
        out_specs=(
            pl.BlockSpec((1, hb, pw, cout_p), lambda i, j: (i, j, 0, 0)),
            pl.BlockSpec((1, 1, 2, cout_p), lambda i, j: (i, j, 0, 0)),
        ),
        out_shape=(
            jax.ShapeDtypeStruct((n, ph, pw, cout_p), jnp.bfloat16),
            jax.ShapeDtypeStruct((n, nrb, 2, cout_p), jnp.float32),
        ),
        scratch_shapes=[pltpu.VMEM((hb + 2, pw + 2, cmid_p), jnp.float32)],
        compiler_params=cparams,
    )(y1, y1, y1, sc1.reshape(1, cmid_p), sh1.reshape(1, cmid_p), w2p, b2p)

    sc2, sh2 = _fold_bn(s2, g2p, be2p, cnt)

    # ---- pass 3: BN2 + ReLU, aliased in place on y2 (no extra HBM buffer) ----
    out = pl.pallas_call(
        _bn2_relu_kernel,
        grid=(n, nrb),
        in_specs=[
            pl.BlockSpec((1, hb, pw, cout_p), center4),
            pl.BlockSpec((1, cout_p), lambda i, j: (0, 0)),
            pl.BlockSpec((1, cout_p), lambda i, j: (0, 0)),
        ],
        out_specs=pl.BlockSpec((1, hb, pw, cout_p), lambda i, j: (i, j, 0, 0)),
        out_shape=jax.ShapeDtypeStruct((n, ph, pw, cout_p), jnp.bfloat16),
        input_output_aliases={0: 0},
        compiler_params=cparams,
    )(y2, sc2.reshape(1, cout_p), sh2.reshape(1, cout_p))

    return out[..., :cout]                                 # drop channel padding


def down_forward_nchw(x_nchw, params, row_block=None):
    """PyTorch-layout adapter: NCHW in -> NCHW out (bf16)."""
    x = jnp.transpose(x_nchw, (0, 2, 3, 1))
    y = down_forward_nhwc(x, params, row_block=row_block)
    return jnp.transpose(y, (0, 3, 1, 2))


# ---------------------------------------------------------------------------
# pure-JAX f32 reference (PyTorch `Down` semantics, training-mode BN)
# ---------------------------------------------------------------------------
def _ref_down_nhwc(x, params):
    w1, b1, g1, be1, w2, b2, g2, be2 = params
    n, h, w, c = x.shape
    t = jnp.max(x.reshape(n, h // 2, 2, w // 2, 2, c), axis=(2, 4))

    def conv_bn_relu(t, wk, bk, gk, bek):
        y = lax.conv_general_dilated(
            t, wk, window_strides=(1, 1), padding="SAME",
            dimension_numbers=("NHWC", "HWIO", "NHWC")) + bk
        mean = jnp.mean(y, axis=(0, 1, 2))
        var = jnp.mean(jnp.square(y - mean), axis=(0, 1, 2))
        return jnp.maximum((y - mean) * lax.rsqrt(var + _EPS) * gk + bek, 0.0)

    return conv_bn_relu(conv_bn_relu(t, w1, b1, g1, be1), w2, b2, g2, be2)


def init_params(key, in_channels, out_channels):
    mid = out_channels                       # DoubleConv default: mid = out
    ks = jax.random.split(key, 8)
    w1 = 0.1 * jax.random.normal(ks[0], (3, 3, in_channels, mid), jnp.float32)
    b1 = 0.1 * jax.random.normal(ks[1], (mid,), jnp.float32)
    g1 = 1.0 + 0.1 * jax.random.normal(ks[2], (mid,), jnp.float32)
    be1 = 0.1 * jax.random.normal(ks[3], (mid,), jnp.float32)
    w2 = 0.1 * jax.random.normal(ks[4], (3, 3, mid, out_channels), jnp.float32)
    b2 = 0.1 * jax.random.normal(ks[5], (out_channels,), jnp.float32)
    g2 = 1.0 + 0.1 * jax.random.normal(ks[6], (out_channels,), jnp.float32)
    be2 = 0.1 * jax.random.normal(ks[7], (out_channels,), jnp.float32)
    return (w1, b1, g1, be1, w2, b2, g2, be2)


if __name__ == "__main__":
    key = jax.random.PRNGKey(0)
    kx, kp = jax.random.split(key)

    N, C_IN, H, W = 2, 4, 16, 16             # NCHW, like the PyTorch module
    C_OUT = 16                                # Down(4, 16)

    x_nchw = jax.random.normal(kx, (N, C_IN, H, W), jnp.float32)
    params = init_params(kp, C_IN, C_OUT)

    # row_block=4 -> 2 row blocks per sample: exercises the halo exchange.
    fwd = jax.jit(lambda xv, pv: down_forward_nchw(xv, pv, row_block=4))
    y = jax.block_until_ready(fwd(x_nchw, params))

    assert y.shape == (N, C_OUT, H // 2, W // 2), y.shape
    y_f32 = y.astype(jnp.float32)
    assert bool(jnp.all(jnp.isfinite(y_f32)))

    # Correctness vs a pure-JAX f32 reference.  The kernel uses bf16 MXU
    # operands and bf16 inter-pass activations (f32 accumulation/statistics),
    # so allow a small tolerance.
    x_nhwc = jnp.transpose(x_nchw, (0, 2, 3, 1))
    y_ref = jnp.transpose(_ref_down_nhwc(x_nhwc, params), (0, 3, 1, 2))
    max_err = float(jnp.max(jnp.abs(y_f32 - y_ref)))
    mean_err = float(jnp.mean(jnp.abs(y_f32 - y_ref)))
    assert max_err < 2e-1, (max_err, mean_err)
    assert mean_err < 5e-2, (max_err, mean_err)

    print("KERNEL_OK")
</pallas_src>

<mosaic_0001>
module attributes {stable_mosaic.version = 11 : i64} {
  func.func @_pool_conv1_kernel(%arg0: i32, %arg1: i32, %arg2: memref<1x4x2x8x8xf32, #tpu.memory_space<vmem>>, %arg3: memref<1x1x2x8x8xf32, #tpu.memory_space<vmem>>, %arg4: memref<1x1x2x8x8xf32, #tpu.memory_space<vmem>>, %arg5: memref<9x4x128xbf16, #tpu.memory_space<vmem>>, %arg6: memref<1x128xf32, #tpu.memory_space<vmem>>, %arg7: memref<1x4x8x128xbf16, #tpu.memory_space<vmem>>, %arg8: memref<1x1x2x128xf32, #tpu.memory_space<vmem>>, %arg9: memref<6x10x4xf32, #tpu.memory_space<vmem>>) attributes {dimension_semantics = [#tpu.dimension_semantics<parallel>, #tpu.dimension_semantics<parallel>], iteration_bounds = array<i64: 2, 2>, scalar_prefetch = 0 : i64, scratch_operands = 1 : i64, tpu.core_type = #tpu.core_type<tc>, window_params = [{transform_indices = @transform_0, window_bounds = array<i64: 1, 4, 2, 8, 8>}, {transform_indices = @transform_1, window_bounds = array<i64: 1, 1, 2, 8, 8>}, {transform_indices = @transform_2, window_bounds = array<i64: 1, 1, 2, 8, 8>}, {pipeline_mode = #tpu.pipeline_mode<synchronous>, transform_indices = @transform_3, window_bounds = array<i64: 9, 4, 128>}, {pipeline_mode = #tpu.pipeline_mode<synchronous>, transform_indices = @transform_4, window_bounds = array<i64: 1, 128>}, {transform_indices = @transform_5, window_bounds = array<i64: 1, 4, 8, 128>}, {transform_indices = @transform_6, window_bounds = array<i64: 1, 1, 2, 128>}]} {
    %cst = arith.constant 0.000000e+00 : f32
    %0 = vector.broadcast %cst : f32 to vector<6x10x4xf32>
    %c0 = arith.constant 0 : index
    %c0_0 = arith.constant 0 : index
    %c0_1 = arith.constant 0 : index
    %1 = vector.load %arg9[%c0, %c0_0, %c0_1] : memref<6x10x4xf32, #tpu.memory_space<vmem>>, vector<6x10x4xf32>
    tpu.vector_store %arg9[%c0, %c0_0, %c0_1], %0 {strides = array<i32>} : memref<6x10x4xf32, #tpu.memory_space<vmem>>, vector<6x10x4xf32>,
    %c0_2 = arith.constant 0 : index
    %c0_3 = arith.constant 0 : index
    %c0_4 = arith.constant 0 : index
    %c0_5 = arith.constant 0 : index
    %c0_6 = arith.constant 0 : index
    %2 = vector.load %arg2[%c0_2, %c0_3, %c0_4, %c0_5, %c0_6] : memref<1x4x2x8x8xf32, #tpu.memory_space<vmem>>, vector<1x4x2x8x8xf32>
    %3 = vector.shape_cast %2 : vector<1x4x2x8x8xf32> to vector<4x2x8x8xf32>
    %4 = vector.extract_strided_slice %3 {offsets = [0, 0, 0, 0], sizes = [4, 1, 8, 8], strides = [1, 1, 1, 1]} : vector<4x2x8x8xf32> to vector<4x1x8x8xf32>
    %5 = vector.shape_cast %4 : vector<4x1x8x8xf32> to vector<4x8x8xf32>
    %6 = vector.extract_strided_slice %3 {offsets = [0, 1, 0, 0], sizes = [4, 1, 8, 8], strides = [1, 1, 1, 1]} : vector<4x2x8x8xf32> to vector<4x1x8x8xf32>
    %7 = vector.shape_cast %6 : vector<4x1x8x8xf32> to vector<4x8x8xf32>
    %8 = arith.maximumf %5, %7 : vector<4x8x8xf32>
    %9 = vector.extract_strided_slice %8 {offsets = [0, 0, 0], sizes = [4, 8, 4], strides = [1, 1, 1]} : vector<4x8x8xf32> to vector<4x8x4xf32>
    %10 = vector.extract_strided_slice %8 {offsets = [0, 0, 4], sizes = [4, 8, 4], strides = [1, 1, 1]} : vector<4x8x8xf32> to vector<4x8x4xf32>
    %11 = arith.maximumf %9, %10 : vector<4x8x4xf32>
    %c1 = arith.constant 1 : index
    %c1_7 = arith.constant 1 : index
    %c0_8 = arith.constant 0 : index
    %12 = vector.load %arg9[%c1, %c1_7, %c0_8] : memref<6x10x4xf32, #tpu.memory_space<vmem>>, vector<4x8x4xf32>
    tpu.vector_store %arg9[%c1, %c1_7, %c0_8], %11 {strides = array<i32>} : memref<6x10x4xf32, #tpu.memory_space<vmem>>, vector<4x8x4xf32>,
    %c0_i32 = arith.constant 0 : i32
    %13 = arith.cmpi sgt, %arg1, %c0_i32 : i32
    %14 = arith.extui %13 : i1 to i32
    %c0_i32_9 = arith.constant 0 : i32
    %15 = arith.cmpi ne, %14, %c0_i32_9 : i32
    scf.if %15 {
      %c0_81 = arith.constant 0 : index
      %c0_82 = arith.constant 0 : index
      %c0_83 = arith.constant 0 : index
      %c0_84 = arith.constant 0 : index
      %c0_85 = arith.constant 0 : index
      %99 = vector.load %arg3[%c0_81, %c0_82, %c0_83, %c0_84, %c0_85] : memref<1x1x2x8x8xf32, #tpu.memory_space<vmem>>, vector<1x1x2x8x8xf32>
      %100 = vector.shape_cast %99 : vector<1x1x2x8x8xf32> to vector<1x2x8x8xf32>
      %101 = vector.extract_strided_slice %100 {offsets = [0, 0, 0, 0], sizes = [1, 1, 8, 8], strides = [1, 1, 1, 1]} : vector<1x2x8x8xf32> to vector<1x1x8x8xf32>
      %102 = vector.shape_cast %101 : vector<1x1x8x8xf32> to vector<1x8x8xf32>
      %103 = vector.extract_strided_slice %100 {offsets = [0, 1, 0, 0], sizes = [1, 1, 8, 8], strides = [1, 1, 1, 1]} : vector<1x2x8x8xf32> to vector<1x1x8x8xf32>
      %104 = vector.shape_cast %103 : vector<1x1x8x8xf32> to vector<1x8x8xf32>
      %105 = arith.maximumf %102, %104 : vector<1x8x8xf32>
      %106 = vector.extract_strided_slice %105 {offsets = [0, 0, 0], sizes = [1, 8, 4], strides = [1, 1, 1]} : vector<1x8x8xf32> to vector<1x8x4xf32>
      %107 = vector.extract_strided_slice %105 {offsets = [0, 0, 4], sizes = [1, 8, 4], strides = [1, 1, 1]} : vector<1x8x8xf32> to vector<1x8x4xf32>
      %108 = arith.maximumf %106, %107 : vector<1x8x4xf32>
      %c0_86 = arith.constant 0 : index
      %c1_87 = arith.constant 1 : index
      %c0_88 = arith.constant 0 : index
      %109 = vector.load %arg9[%c0_86, %c1_87, %c0_88] : memref<6x10x4xf32, #tpu.memory_space<vmem>>, vector<1x8x4xf32>
      tpu.vector_store %arg9[%c0_86, %c1_87, %c0_88], %108 {strides = array<i32>} : memref<6x10x4xf32, #tpu.memory_space<vmem>>, vector<1x8x4xf32>,
    } else {
    }
    %c1_i32 = arith.constant 1 : i32
    %16 = arith.cmpi slt, %arg1, %c1_i32 : i32
    %17 = arith.extui %16 : i1 to i32
    %c0_i32_10 = arith.constant 0 : i32
    %18 = arith.cmpi ne, %17, %c0_i32_10 : i32
    scf.if %18 {
      %c0_81 = arith.constant 0 : index
      %c0_82 = arith.constant 0 : index
      %c0_83 = arith.constant 0 : index
      %c0_84 = arith.constant 0 : index
      %c0_85 = arith.constant 0 : index
      %99 = vector.load %arg4[%c0_81, %c0_82, %c0_83, %c0_84, %c0_85] : memref<1x1x2x8x8xf32, #tpu.memory_space<vmem>>, vector<1x1x2x8x8xf32>
      %100 = vector.shape_cast %99 : vector<1x1x2x8x8xf32> to vector<1x2x8x8xf32>
      %101 = vector.extract_strided_slice %100 {offsets = [0, 0, 0, 0], sizes = [1, 1, 8, 8], strides = [1, 1, 1, 1]} : vector<1x2x8x8xf32> to vector<1x1x8x8xf32>
      %102 = vector.shape_cast %101 : vector<1x1x8x8xf32> to vector<1x8x8xf32>
      %103 = vector.extract_strided_slice %100 {offsets = [0, 1, 0, 0], sizes = [1, 1, 8, 8], strides = [1, 1, 1, 1]} : vector<1x2x8x8xf32> to vector<1x1x8x8xf32>
      %104 = vector.shape_cast %103 : vector<1x1x8x8xf32> to vector<1x8x8xf32>
      %105 = arith.maximumf %102, %104 : vector<1x8x8xf32>
      %106 = vector.extract_strided_slice %105 {offsets = [0, 0, 0], sizes = [1, 8, 4], strides = [1, 1, 1]} : vector<1x8x8xf32> to vector<1x8x4xf32>
      %107 = vector.extract_strided_slice %105 {offsets = [0, 0, 4], sizes = [1, 8, 4], strides = [1, 1, 1]} : vector<1x8x8xf32> to vector<1x8x4xf32>
      %108 = arith.maximumf %106, %107 : vector<1x8x4xf32>
      %c5_86 = arith.constant 5 : index
      %c1_87 = arith.constant 1 : index
      %c0_88 = arith.constant 0 : index
      %109 = vector.load %arg9[%c5_86, %c1_87, %c0_88] : memref<6x10x4xf32, #tpu.memory_space<vmem>>, vector<1x8x4xf32>
      tpu.vector_store %arg9[%c5_86, %c1_87, %c0_88], %108 {strides = array<i32>} : memref<6x10x4xf32, #tpu.memory_space<vmem>>, vector<1x8x4xf32>,
    } else {
    }
    %cst_11 = arith.constant 0.000000e+00 : f32
    %19 = vector.broadcast %cst_11 : f32 to vector<32x128xf32>
    %c0_12 = arith.constant 0 : index
    %c0_13 = arith.constant 0 : index
    %c0_14 = arith.constant 0 : index
    %20 = vector.load %arg9[%c0_12, %c0_13, %c0_14] : memref<6x10x4xf32, #tpu.memory_space<vmem>>, vector<4x8x4xf32>
    %21 = vector.shape_cast %20 : vector<4x8x4xf32> to vector<32x4xf32>
    %22 = arith.truncf %21 : vector<32x4xf32> to vector<32x4xbf16>
    %c0_15 = arith.constant 0 : index
    %c0_16 = arith.constant 0 : index
    %c0_17 = arith.constant 0 : index
    %23 = vector.load %arg5[%c0_15, %c0_16, %c0_17] : memref<9x4x128xbf16, #tpu.memory_space<vmem>>, vector<1x4x128xbf16>
    %24 = vector.shape_cast %23 : vector<1x4x128xbf16> to vector<4x128xbf16>
    %cst_18 = arith.constant dense<0.000000e+00> : vector<32x128xf32>
    %25 = tpu.matmul %22, %24, %cst_18 {dimension_numbers = #tpu.dot_dimension_numbers<[1], [0], [0], [1], [0, 0, 1, 1], [], []>} : vector<32x4xbf16>, vector<4x128xbf16>, vector<32x128xf32> -> vector<32x128xf32>
    %26 = arith.addf %19, %25 : vector<32x128xf32>
    %c0_19 = arith.constant 0 : index
    %c1_20 = arith.constant 1 : index
    %c0_21 = arith.constant 0 : index
    %27 = vector.load %arg9[%c0_19, %c1_20, %c0_21] : memref<6x10x4xf32, #tpu.memory_space<vmem>>, vector<4x8x4xf32>
    %28 = vector.shape_cast %27 : vector<4x8x4xf32> to vector<32x4xf32>
    %29 = arith.truncf %28 : vector<32x4xf32> to vector<32x4xbf16>
    %c1_22 = arith.constant 1 : index
    %c0_23 = arith.constant 0 : index
    %c0_24 = arith.constant 0 : index
    %30 = vector.load %arg5[%c1_22, %c0_23, %c0_24] : memref<9x4x128xbf16, #tpu.memory_space<vmem>>, vector<1x4x128xbf16>
    %31 = vector.shape_cast %30 : vector<1x4x128xbf16> to vector<4x128xbf16>
    %cst_25 = arith.constant dense<0.000000e+00> : vector<32x128xf32>
    %32 = tpu.matmul %29, %31, %cst_25 {dimension_numbers = #tpu.dot_dimension_numbers<[1], [0], [0], [1], [0, 0, 1, 1], [], []>} : vector<32x4xbf16>, vector<4x128xbf16>, vector<32x128xf32> -> vector<32x128xf32>
    %33 = arith.addf %26, %32 : vector<32x128xf32>
    %c0_26 = arith.constant 0 : index
    %c2 = arith.constant 2 : index
    %c0_27 = arith.constant 0 : index
    %34 = vector.load %arg9[%c0_26, %c2, %c0_27] : memref<6x10x4xf32, #tpu.memory_space<vmem>>, vector<4x8x4xf32>
    %35 = vector.shape_cast %34 : vector<4x8x4xf32> to vector<32x4xf32>
    %36 = arith.truncf %35 : vector<32x4xf32> to vector<32x4xbf16>
    %c2_28 = arith.constant 2 : index
    %c0_29 = arith.constant 0 : index
    %c0_30 = arith.constant 0 : index
    %37 = vector.load %arg5[%c2_28, %c0_29, %c0_30] : memref<9x4x128xbf16, #tpu.memory_space<vmem>>, vector<1x4x128xbf16>
    %38 = vector.shape_cast %37 : vector<1x4x128xbf16> to vector<4x128xbf16>
    %cst_31 = arith.constant dense<0.000000e+00> : vector<32x128xf32>
    %39 = tpu.matmul %36, %38, %cst_31 {dimension_numbers = #tpu.dot_dimension_numbers<[1], [0], [0], [1], [0, 0, 1, 1], [], []>} : vector<32x4xbf16>, vector<4x128xbf16>, vector<32x128xf32> -> vector<32x128xf32>
    %40 = arith.addf %33, %39 : vector<32x128xf32>
    %c1_32 = arith.constant 1 : index
    %c0_33 = arith.constant 0 : index
    %c0_34 = arith.constant 0 : index
    %41 = vector.load %arg9[%c1_32, %c0_33, %c0_34] : memref<6x10x4xf32, #tpu.memory_space<vmem>>, vector<4x8x4xf32>
    %42 = vector.shape_cast %41 : vector<4x8x4xf32> to vector<32x4xf32>
    %43 = arith.truncf %42 : vector<32x4xf32> to vector<32x4xbf16>
    %c3 = arith.constant 3 : index
    %c0_35 = arith.constant 0 : index
    %c0_36 = arith.constant 0 : index
    %44 = vector.load %arg5[%c3, %c0_35, %c0_36] : memref<9x4x128xbf16, #tpu.memory_space<vmem>>, vector<1x4x128xbf16>
    %45 = vector.shape_cast %44 : vector<1x4x128xbf16> to vector<4x128xbf16>
    %cst_37 = arith.constant dense<0.000000e+00> : vector<32x128xf32>
    %46 = tpu.matmul %43, %45, %cst_37 {dimension_numbers = #tpu.dot_dimension_numbers<[1], [0], [0], [1], [0, 0, 1, 1], [], []>} : vector<32x4xbf16>, vector<4x128xbf16>, vector<32x128xf32> -> vector<32x128xf32>
    %47 = arith.addf %40, %46 : vector<32x128xf32>
    %c1_38 = arith.constant 1 : index
    %c1_39 = arith.constant 1 : index
    %c0_40 = arith.constant 0 : index
    %48 = vector.load %arg9[%c1_38, %c1_39, %c0_40] : memref<6x10x4xf32, #tpu.memory_space<vmem>>, vector<4x8x4xf32>
    %49 = vector.shape_cast %48 : vector<4x8x4xf32> to vector<32x4xf32>
    %50 = arith.truncf %49 : vector<32x4xf32> to vector<32x4xbf16>
    %c4 = arith.constant 4 : index
    %c0_41 = arith.constant 0 : index
    %c0_42 = arith.constant 0 : index
    %51 = vector.load %arg5[%c4, %c0_41, %c0_42] : memref<9x4x128xbf16, #tpu.memory_space<vmem>>, vector<1x4x128xbf16>
    %52 = vector.shape_cast %51 : vector<1x4x128xbf16> to vector<4x128xbf16>
    %cst_43 = arith.constant dense<0.000000e+00> : vector<32x128xf32>
    %53 = tpu.matmul %50, %52, %cst_43 {dimension_numbers = #tpu.dot_dimension_numbers<[1], [0], [0], [1], [0, 0, 1, 1], [], []>} : vector<32x4xbf16>, vector<4x128xbf16>, vector<32x128xf32> -> vector<32x128xf32>
    %54 = arith.addf %47, %53 : vector<32x128xf32>
    %c1_44 = arith.constant 1 : index
    %c2_45 = arith.constant 2 : index
    %c0_46 = arith.constant 0 : index
    %55 = vector.load %arg9[%c1_44, %c2_45, %c0_46] : memref<6x10x4xf32, #tpu.memory_space<vmem>>, vector<4x8x4xf32>
    %56 = vector.shape_cast %55 : vector<4x8x4xf32> to vector<32x4xf32>
    %57 = arith.truncf %56 : vector<32x4xf32> to vector<32x4xbf16>
    %c5 = arith.constant 5 : index
    %c0_47 = arith.constant 0 : index
    %c0_48 = arith.constant 0 : index
    %58 = vector.load %arg5[%c5, %c0_47, %c0_48] : memref<9x4x128xbf16, #tpu.memory_space<vmem>>, vector<1x4x128xbf16>
    %59 = vector.shape_cast %58 : vector<1x4x128xbf16> to vector<4x128xbf16>
    %cst_49 = arith.constant dense<0.000000e+00> : vector<32x128xf32>
    %60 = tpu.matmul %57, %59, %cst_49 {dimension_numbers = #tpu.dot_dimension_numbers<[1], [0], [0], [1], [0, 0, 1, 1], [], []>} : vector<32x4xbf16>, vector<4x128xbf16>, vector<32x128xf32> -> vector<32x128xf32>
    %61 = arith.addf %54, %60 : vector<32x128xf32>
    %c2_50 = arith.constant 2 : index
    %c0_51 = arith.constant 0 : index
    %c0_52 = arith.constant 0 : index
    %62 = vector.load %arg9[%c2_50, %c0_51, %c0_52] : memref<6x10x4xf32, #tpu.memory_space<vmem>>, vector<4x8x4xf32>
    %63 = vector.shape_cast %62 : vector<4x8x4xf32> to vector<32x4xf32>
    %64 = arith.truncf %63 : vector<32x4xf32> to vector<32x4xbf16>
    %c6 = arith.constant 6 : index
    %c0_53 = arith.constant 0 : index
    %c0_54 = arith.constant 0 : index
    %65 = vector.load %arg5[%c6, %c0_53, %c0_54] : memref<9x4x128xbf16, #tpu.memory_space<vmem>>, vector<1x4x128xbf16>
    %66 = vector.shape_cast %65 : vector<1x4x128xbf16> to vector<4x128xbf16>
    %cst_55 = arith.constant dense<0.000000e+00> : vector<32x128xf32>
    %67 = tpu.matmul %64, %66, %cst_55 {dimension_numbers = #tpu.dot_dimension_numbers<[1], [0], [0], [1], [0, 0, 1, 1], [], []>} : vector<32x4xbf16>, vector<4x128xbf16>, vector<32x128xf32> -> vector<32x128xf32>
    %68 = arith.addf %61, %67 : vector<32x128xf32>
    %c2_56 = arith.constant 2 : index
    %c1_57 = arith.constant 1 : index
    %c0_58 = arith.constant 0 : index
    %69 = vector.load %arg9[%c2_56, %c1_57, %c0_58] : memref<6x10x4xf32, #tpu.memory_space<vmem>>, vector<4x8x4xf32>
    %70 = vector.shape_cast %69 : vector<4x8x4xf32> to vector<32x4xf32>
    %71 = arith.truncf %70 : vector<32x4xf32> to vector<32x4xbf16>
    %c7 = arith.constant 7 : index
    %c0_59 = arith.constant 0 : index
    %c0_60 = arith.constant 0 : index
    %72 = vector.load %arg5[%c7, %c0_59, %c0_60] : memref<9x4x128xbf16, #tpu.memory_space<vmem>>, vector<1x4x128xbf16>
    %73 = vector.shape_cast %72 : vector<1x4x128xbf16> to vector<4x128xbf16>
    %cst_61 = arith.constant dense<0.000000e+00> : vector<32x128xf32>
    %74 = tpu.matmul %71, %73, %cst_61 {dimension_numbers = #tpu.dot_dimension_numbers<[1], [0], [0], [1], [0, 0, 1, 1], [], []>} : vector<32x4xbf16>, vector<4x128xbf16>, vector<32x128xf32> -> vector<32x128xf32>
    %75 = arith.addf %68, %74 : vector<32x128xf32>
    %c2_62 = arith.constant 2 : index
    %c2_63 = arith.constant 2 : index
    %c0_64 = arith.constant 0 : index
    %76 = vector.load %arg9[%c2_62, %c2_63, %c0_64] : memref<6x10x4xf32, #tpu.memory_space<vmem>>, vector<4x8x4xf32>
    %77 = vector.shape_cast %76 : vector<4x8x4xf32> to vector<32x4xf32>
    %78 = arith.truncf %77 : vector<32x4xf32> to vector<32x4xbf16>
    %c8 = arith.constant 8 : index
    %c0_65 = arith.constant 0 : index
    %c0_66 = arith.constant 0 : index
    %79 = vector.load %arg5[%c8, %c0_65, %c0_66] : memref<9x4x128xbf16, #tpu.memory_space<vmem>>, vector<1x4x128xbf16>
    %80 = vector.shape_cast %79 : vector<1x4x128xbf16> to vector<4x128xbf16>
    %cst_67 = arith.constant dense<0.000000e+00> : vector<32x128xf32>
    %81 = tpu.matmul %78, %80, %cst_67 {dimension_numbers = #tpu.dot_dimension_numbers<[1], [0], [0], [1], [0, 0, 1, 1], [], []>} : vector<32x4xbf16>, vector<4x128xbf16>, vector<32x128xf32> -> vector<32x128xf32>
    %82 = arith.addf %75, %81 : vector<32x128xf32>
    %c0_68 = arith.constant 0 : index
    %c0_69 = arith.constant 0 : index
    %83 = vector.load %arg6[%c0_68, %c0_69] : memref<1x128xf32, #tpu.memory_space<vmem>>, vector<1x128xf32>
    %84 = vector.broadcast %83 : vector<1x128xf32> to vector<32x128xf32>
    %85 = arith.addf %82, %84 : vector<32x128xf32>
    %cst_70 = arith.constant 1.000000e+00 : f32
    %86 = vector.broadcast %cst_70 : f32 to vector<1x32xf32>
    %cst_71 = arith.constant dense<0.000000e+00> : vector<1x128xf32>
    %87 = tpu.matmul %86, %85, %cst_71 {dimension_numbers = #tpu.dot_dimension_numbers<[1], [0], [0], [1], [0, 0, 1, 1], [], []>} : vector<1x32xf32>, vector<32x128xf32>, vector<1x128xf32> -> vector<1x128xf32>
    %88 = arith.mulf %85, %85 : vector<32x128xf32>
    %cst_72 = arith.constant dense<0.000000e+00> : vector<1x128xf32>
    %89 = tpu.matmul %86, %88, %cst_72 {dimension_numbers = #tpu.dot_dimension_numbers<[1], [0], [0], [1], [0, 0, 1, 1], [], []>} : vector<1x32xf32>, vector<32x128xf32>, vector<1x128xf32> -> vector<1x128xf32>
    %90 = tpu.concatenate %87, %89 in 0 : vector<1x128xf32>, vector<1x128xf32> -> vector<2x128xf32>
    %c0_73 = arith.constant 0 : index
    %c0_74 = arith.constant 0 : index
    %c0_75 = arith.constant 0 : index
    %c0_76 = arith.constant 0 : index
    %91 = vector.load %arg8[%c0_73, %c0_74, %c0_75, %c0_76] : memref<1x1x2x128xf32, #tpu.memory_space<vmem>>, vector<1x1x2x128xf32>
    %92 = vector.shape_cast %91 : vector<1x1x2x128xf32> to vector<2x128xf32>
    %93 = vector.shape_cast %90 : vector<2x128xf32> to vector<1x1x2x128xf32>
    tpu.vector_store %arg8[%c0_73, %c0_74, %c0_75, %c0_76], %93 {strides = array<i32>} : memref<1x1x2x128xf32, #tpu.memory_space<vmem>>, vector<1x1x2x128xf32>,
    %94 = vector.shape_cast %85 : vector<32x128xf32> to vector<4x8x128xf32>
    %95 = arith.truncf %94 : vector<4x8x128xf32> to vector<4x8x128xbf16>
    %c0_77 = arith.constant 0 : index
    %c0_78 = arith.constant 0 : index
    %c0_79 = arith.constant 0 : index
    %c0_80 = arith.constant 0 : index
    %96 = vector.load %arg7[%c0_77, %c0_78, %c0_79, %c0_80] : memref<1x4x8x128xbf16, #tpu.memory_space<vmem>>, vector<1x4x8x128xbf16>
    %97 = vector.shape_cast %96 : vector<1x4x8x128xbf16> to vector<4x8x128xbf16>
    %98 = vector.shape_cast %95 : vector<4x8x128xbf16> to vector<1x4x8x128xbf16>
    tpu.vector_store %arg7[%c0_77, %c0_78, %c0_79, %c0_80], %98 {strides = array<i32>} : memref<1x4x8x128xbf16, #tpu.memory_space<vmem>>, vector<1x4x8x128xbf16>,
    return
  }
  func.func @transform_0(%arg0: i32, %arg1: i32) -> (i32, i32, i32, i32, i32) {
    %c0_i32 = arith.constant 0 : i32
    %c0_i32_0 = arith.constant 0 : i32
    %c0_i32_1 = arith.constant 0 : i32
    %c0_i32_2 = arith.constant 0 : i32
    return %arg0, %arg1, %c0_i32, %c0_i32_0, %c0_i32_1 : i32, i32, i32, i32, i32
  }
  func.func @transform_1(%arg0: i32, %arg1: i32) -> (i32, i32, i32, i32, i32) {
    %c4_i32 = arith.constant 4 : i32
    %0 = arith.muli %arg1, %c4_i32 : i32
    %c1_i32 = arith.constant 1 : i32
    %1 = arith.subi %0, %c1_i32 : i32
    %c0_i32 = arith.constant 0 : i32
    %2 = arith.maxsi %1, %c0_i32 : i32
    %c0_i32_0 = arith.constant 0 : i32
    %c0_i32_1 = arith.constant 0 : i32
    %c0_i32_2 = arith.constant 0 : i32
    %c0_i32_3 = arith.constant 0 : i32
    return %arg0, %2, %c0_i32_0, %c0_i32_1, %c0_i32_2 : i32, i32, i32, i32, i32
  }
  func.func @transform_2(%arg0: i32, %arg1: i32) -> (i32, i32, i32, i32, i32) {
    %c1_i32 = arith.constant 1 : i32
    %0 = arith.addi %arg1, %c1_i32 : i32
    %c4_i32 = arith.constant 4 : i32
    %1 = arith.muli %0, %c4_i32 : i32
    %c7_i32 = arith.constant 7 : i32
    %2 = arith.minsi %1, %c7_i32 : i32
    %c0_i32 = arith.constant 0 : i32
    %c0_i32_0 = arith.constant 0 : i32
    %c0_i32_1 = arith.constant 0 : i32
    %c0_i32_2 = arith.constant 0 : i32
    return %arg0, %2, %c0_i32, %c0_i32_0, %c0_i32_1 : i32, i32, i32, i32, i32
  }
  func.func @transform_3(%arg0: i32, %arg1: i32) -> (i32, i32, i32) {
    %c0_i32 = arith.constant 0 : i32
    %c0_i32_0 = arith.constant 0 : i32
    %c0_i32_1 = arith.constant 0 : i32
    %c0_i32_2 = arith.constant 0 : i32
    return %c0_i32, %c0_i32_0, %c0_i32_1 : i32, i32, i32
  }
  func.func @transform_4(%arg0: i32, %arg1: i32) -> (i32, i32) {
    %c0_i32 = arith.constant 0 : i32
    %c0_i32_0 = arith.constant 0 : i32
    %c0_i32_1 = arith.constant 0 : i32
    return %c0_i32, %c0_i32_0 : i32, i32
  }
  func.func @transform_5(%arg0: i32, %arg1: i32) -> (i32, i32, i32, i32) {
    %c0_i32 = arith.constant 0 : i32
    %c0_i32_0 = arith.constant 0 : i32
    %c0_i32_1 = arith.constant 0 : i32
    return %arg0, %arg1, %c0_i32, %c0_i32_0 : i32, i32, i32, i32
  }
  func.func @transform_6(%arg0: i32, %arg1: i32) -> (i32, i32, i32, i32) {
    %c0_i32 = arith.constant 0 : i32
    %c0_i32_0 = arith.constant 0 : i32
    %c0_i32_1 = arith.constant 0 : i32
    return %arg0, %arg1, %c0_i32, %c0_i32_0 : i32, i32, i32, i32
  }
}

module attributes {stable_mosaic.version = 11 : i64} {
  func.func @_bn1_relu_conv2_kernel(%arg0: i32, %arg1: i32, %arg2: memref<1x4x8x128xbf16, #tpu.memory_space<vmem>>, %arg3: memref<1x1x8x128xbf16, #tpu.memory_space<vmem>>, %arg4: memref<1x1x8x128xbf16, #tpu.memory_space<vmem>>, %arg5: memref<1x128xf32, #tpu.memory_space<vmem>>, %arg6: memref<1x128xf32, #tpu.memory_space<vmem>>, %arg7: memref<9x128x128xbf16, #tpu.memory_space<vmem>>, %arg8: memref<1x128xf32, #tpu.memory_space<vmem>>, %arg9: memref<1x4x8x128xbf16, #tpu.memory_space<vmem>>, %arg10: memref<1x1x2x128xf32, #tpu.memory_space<vmem>>, %arg11: memref<6x10x128xf32, #tpu.memory_space<vmem>>) attributes {dimension_semantics = [#tpu.dimension_semantics<parallel>, #tpu.dimension_semantics<parallel>], iteration_bounds = array<i64: 2, 2>, scalar_prefetch = 0 : i64, scratch_operands = 1 : i64, tpu.core_type = #tpu.core_type<tc>, window_params = [{transform_indices = @transform_0, window_bounds = array<i64: 1, 4, 8, 128>}, {transform_indices = @transform_1, window_bounds = array<i64: 1, 1, 8, 128>}, {transform_indices = @transform_2, window_bounds = array<i64: 1, 1, 8, 128>}, {pipeline_mode = #tpu.pipeline_mode<synchronous>, transform_indices = @transform_3, window_bounds = array<i64: 1, 128>}, {pipeline_mode = #tpu.pipeline_mode<synchronous>, transform_indices = @transform_4, window_bounds = array<i64: 1, 128>}, {pipeline_mode = #tpu.pipeline_mode<synchronous>, transform_indices = @transform_5, window_bounds = array<i64: 9, 128, 128>}, {pipeline_mode = #tpu.pipeline_mode<synchronous>, transform_indices = @transform_6, window_bounds = array<i64: 1, 128>}, {transform_indices = @transform_7, window_bounds = array<i64: 1, 4, 8, 128>}, {transform_indices = @transform_8, window_bounds = array<i64: 1, 1, 2, 128>}]} {
    %cst = arith.constant 0.000000e+00 : f32
    %0 = vector.broadcast %cst : f32 to vector<6x10x128xf32>
    %c0 = arith.constant 0 : index
    %c0_0 = arith.constant 0 : index
    %c0_1 = arith.constant 0 : index
    %1 = vector.load %arg11[%c0, %c0_0, %c0_1] : memref<6x10x128xf32, #tpu.memory_space<vmem>>, vector<6x10x128xf32>
    tpu.vector_store %arg11[%c0, %c0_0, %c0_1], %0 {strides = array<i32>} : memref<6x10x128xf32, #tpu.memory_space<vmem>>, vector<6x10x128xf32>,
    %c0_2 = arith.constant 0 : index
    %c0_3 = arith.constant 0 : index
    %c0_4 = arith.constant 0 : index
    %c0_5 = arith.constant 0 : index
    %2 = vector.load %arg2[%c0_2, %c0_3, %c0_4, %c0_5] : memref<1x4x8x128xbf16, #tpu.memory_space<vmem>>, vector<1x4x8x128xbf16>
    %3 = vector.shape_cast %2 : vector<1x4x8x128xbf16> to vector<4x8x128xbf16>
    %4 = arith.extf %3 : vector<4x8x128xbf16> to vector<4x8x128xf32>
    %c0_6 = arith.constant 0 : index
    %c0_7 = arith.constant 0 : index
    %5 = vector.load %arg5[%c0_6, %c0_7] : memref<1x128xf32, #tpu.memory_space<vmem>>, vector<1x128xf32>
    %6 = vector.shape_cast %5 : vector<1x128xf32> to vector<1x1x128xf32>
    %7 = vector.broadcast %6 : vector<1x1x128xf32> to vector<4x8x128xf32>
    %8 = arith.mulf %4, %7 : vector<4x8x128xf32>
    %c0_8 = arith.constant 0 : index
    %c0_9 = arith.constant 0 : index
    %9 = vector.load %arg6[%c0_8, %c0_9] : memref<1x128xf32, #tpu.memory_space<vmem>>, vector<1x128xf32>
    %10 = vector.shape_cast %9 : vector<1x128xf32> to vector<1x1x128xf32>
    %11 = vector.broadcast %10 : vector<1x1x128xf32> to vector<4x8x128xf32>
    %12 = arith.addf %8, %11 : vector<4x8x128xf32>
    %cst_10 = arith.constant 0.000000e+00 : f32
    %13 = vector.broadcast %cst_10 : f32 to vector<4x8x128xf32>
    %14 = arith.maximumf %12, %13 : vector<4x8x128xf32>
    %c1 = arith.constant 1 : index
    %c1_11 = arith.constant 1 : index
    %c0_12 = arith.constant 0 : index
    %15 = vector.load %arg11[%c1, %c1_11, %c0_12] : memref<6x10x128xf32, #tpu.memory_space<vmem>>, vector<4x8x128xf32>
    tpu.vector_store %arg11[%c1, %c1_11, %c0_12], %14 {strides = array<i32>} : memref<6x10x128xf32, #tpu.memory_space<vmem>>, vector<4x8x128xf32>,
    %c0_i32 = arith.constant 0 : i32
    %16 = arith.cmpi sgt, %arg1, %c0_i32 : i32
    %17 = arith.extui %16 : i1 to i32
    %c0_i32_13 = arith.constant 0 : i32
    %18 = arith.cmpi ne, %17, %c0_i32_13 : i32
    scf.if %18 {
      %c0_85 = arith.constant 0 : index
      %c0_86 = arith.constant 0 : index
      %c0_87 = arith.constant 0 : index
      %c0_88 = arith.constant 0 : index
      %102 = vector.load %arg3[%c0_85, %c0_86, %c0_87, %c0_88] : memref<1x1x8x128xbf16, #tpu.memory_space<vmem>>, vector<1x1x8x128xbf16>
      %103 = vector.shape_cast %102 : vector<1x1x8x128xbf16> to vector<1x8x128xbf16>
      %104 = arith.extf %103 : vector<1x8x128xbf16> to vector<1x8x128xf32>
      %c0_89 = arith.constant 0 : index
      %c0_90 = arith.constant 0 : index
      %105 = vector.load %arg5[%c0_89, %c0_90] : memref<1x128xf32, #tpu.memory_space<vmem>>, vector<1x128xf32>
      %106 = vector.shape_cast %105 : vector<1x128xf32> to vector<1x1x128xf32>
      %107 = vector.broadcast %106 : vector<1x1x128xf32> to vector<1x8x128xf32>
      %108 = arith.mulf %104, %107 : vector<1x8x128xf32>
      %c0_91 = arith.constant 0 : index
      %c0_92 = arith.constant 0 : index
      %109 = vector.load %arg6[%c0_91, %c0_92] : memref<1x128xf32, #tpu.memory_space<vmem>>, vector<1x128xf32>
      %110 = vector.shape_cast %109 : vector<1x128xf32> to vector<1x1x128xf32>
      %111 = vector.broadcast %110 : vector<1x1x128xf32> to vector<1x8x128xf32>
      %112 = arith.addf %108, %111 : vector<1x8x128xf32>
      %cst_93 = arith.constant 0.000000e+00 : f32
      %113 = vector.broadcast %cst_93 : f32 to vector<1x8x128xf32>
      %114 = arith.maximumf %112, %113 : vector<1x8x128xf32>
      %c0_94 = arith.constant 0 : index
      %c1_95 = arith.constant 1 : index
      %c0_96 = arith.constant 0 : index
      %115 = vector.load %arg11[%c0_94, %c1_95, %c0_96] : memref<6x10x128xf32, #tpu.memory_space<vmem>>, vector<1x8x128xf32>
      tpu.vector_store %arg11[%c0_94, %c1_95, %c0_96], %114 {strides = array<i32>} : memref<6x10x128xf32, #tpu.memory_space<vmem>>, vector<1x8x128xf32>,
    } else {
    }
    %c1_i32 = arith.constant 1 : i32
    %19 = arith.cmpi slt, %arg1, %c1_i32 : i32
    %20 = arith.extui %19 : i1 to i32
    %c0_i32_14 = arith.constant 0 : i32
    %21 = arith.cmpi ne, %20, %c0_i32_14 : i32
    scf.if %21 {
      %c0_85 = arith.constant 0 : index
      %c0_86 = arith.constant 0 : index
      %c0_87 = arith.constant 0 : index
      %c0_88 = arith.constant 0 : index
      %102 = vector.load %arg4[%c0_85, %c0_86, %c0_87, %c0_88] : memref<1x1x8x128xbf16, #tpu.memory_space<vmem>>, vector<1x1x8x128xbf16>
      %103 = vector.shape_cast %102 : vector<1x1x8x128xbf16> to vector<1x8x128xbf16>
      %104 = arith.extf %103 : vector<1x8x128xbf16> to vector<1x8x128xf32>
      %c0_89 = arith.constant 0 : index
      %c0_90 = arith.constant 0 : index
      %105 = vector.load %arg5[%c0_89, %c0_90] : memref<1x128xf32, #tpu.memory_space<vmem>>, vector<1x128xf32>
      %106 = vector.shape_cast %105 : vector<1x128xf32> to vector<1x1x128xf32>
      %107 = vector.broadcast %106 : vector<1x1x128xf32> to vector<1x8x128xf32>
      %108 = arith.mulf %104, %107 : vector<1x8x128xf32>
      %c0_91 = arith.constant 0 : index
      %c0_92 = arith.constant 0 : index
      %109 = vector.load %arg6[%c0_91, %c0_92] : memref<1x128xf32, #tpu.memory_space<vmem>>, vector<1x128xf32>
      %110 = vector.shape_cast %109 : vector<1x128xf32> to vector<1x1x128xf32>
      %111 = vector.broadcast %110 : vector<1x1x128xf32> to vector<1x8x128xf32>
      %112 = arith.addf %108, %111 : vector<1x8x128xf32>
      %cst_93 = arith.constant 0.000000e+00 : f32
      %113 = vector.broadcast %cst_93 : f32 to vector<1x8x128xf32>
      %114 = arith.maximumf %112, %113 : vector<1x8x128xf32>
      %c5_94 = arith.constant 5 : index
      %c1_95 = arith.constant 1 : index
      %c0_96 = arith.constant 0 : index
      %115 = vector.load %arg11[%c5_94, %c1_95, %c0_96] : memref<6x10x128xf32, #tpu.memory_space<vmem>>, vector<1x8x128xf32>
      tpu.vector_store %arg11[%c5_94, %c1_95, %c0_96], %114 {strides = array<i32>} : memref<6x10x128xf32, #tpu.memory_space<vmem>>, vector<1x8x128xf32>,
    } else {
    }
    %cst_15 = arith.constant 0.000000e+00 : f32
    %22 = vector.broadcast %cst_15 : f32 to vector<32x128xf32>
    %c0_16 = arith.constant 0 : index
    %c0_17 = arith.constant 0 : index
    %c0_18 = arith.constant 0 : index
    %23 = vector.load %arg11[%c0_16, %c0_17, %c0_18] : memref<6x10x128xf32, #tpu.memory_space<vmem>>, vector<4x8x128xf32>
    %24 = vector.shape_cast %23 : vector<4x8x128xf32> to vector<32x128xf32>
    %25 = arith.truncf %24 : vector<32x128xf32> to vector<32x128xbf16>
    %c0_19 = arith.constant 0 : index
    %c0_20 = arith.constant 0 : index
    %c0_21 = arith.constant 0 : index
    %26 = vector.load %arg7[%c0_19, %c0_20, %c0_21] : memref<9x128x128xbf16, #tpu.memory_space<vmem>>, vector<1x128x128xbf16>
    %27 = vector.shape_cast %26 : vector<1x128x128xbf16> to vector<128x128xbf16>
    %cst_22 = arith.constant dense<0.000000e+00> : vector<32x128xf32>
    %28 = tpu.matmul %25, %27, %cst_22 {dimension_numbers = #tpu.dot_dimension_numbers<[1], [0], [0], [1], [0, 0, 1, 1], [], []>} : vector<32x128xbf16>, vector<128x128xbf16>, vector<32x128xf32> -> vector<32x128xf32>
    %29 = arith.addf %22, %28 : vector<32x128xf32>
    %c0_23 = arith.constant 0 : index
    %c1_24 = arith.constant 1 : index
    %c0_25 = arith.constant 0 : index
    %30 = vector.load %arg11[%c0_23, %c1_24, %c0_25] : memref<6x10x128xf32, #tpu.memory_space<vmem>>, vector<4x8x128xf32>
    %31 = vector.shape_cast %30 : vector<4x8x128xf32> to vector<32x128xf32>
    %32 = arith.truncf %31 : vector<32x128xf32> to vector<32x128xbf16>
    %c1_26 = arith.constant 1 : index
    %c0_27 = arith.constant 0 : index
    %c0_28 = arith.constant 0 : index
    %33 = vector.load %arg7[%c1_26, %c0_27, %c0_28] : memref<9x128x128xbf16, #tpu.memory_space<vmem>>, vector<1x128x128xbf16>
    %34 = vector.shape_cast %33 : vector<1x128x128xbf16> to vector<128x128xbf16>
    %cst_29 = arith.constant dense<0.000000e+00> : vector<32x128xf32>
    %35 = tpu.matmul %32, %34, %cst_29 {dimension_numbers = #tpu.dot_dimension_numbers<[1], [0], [0], [1], [0, 0, 1, 1], [], []>} : vector<32x128xbf16>, vector<128x128xbf16>, vector<32x128xf32> -> vector<32x128xf32>
    %36 = arith.addf %29, %35 : vector<32x128xf32>
    %c0_30 = arith.constant 0 : index
    %c2 = arith.constant 2 : index
    %c0_31 = arith.constant 0 : index
    %37 = vector.load %arg11[%c0_30, %c2, %c0_31] : memref<6x10x128xf32, #tpu.memory_space<vmem>>, vector<4x8x128xf32>
    %38 = vector.shape_cast %37 : vector<4x8x128xf32> to vector<32x128xf32>
    %39 = arith.truncf %38 : vector<32x128xf32> to vector<32x128xbf16>
    %c2_32 = arith.constant 2 : index
    %c0_33 = arith.constant 0 : index
    %c0_34 = arith.constant 0 : index
    %40 = vector.load %arg7[%c2_32, %c0_33, %c0_34] : memref<9x128x128xbf16, #tpu.memory_space<vmem>>, vector<1x128x128xbf16>
    %41 = vector.shape_cast %40 : vector<1x128x128xbf16> to vector<128x128xbf16>
    %cst_35 = arith.constant dense<0.000000e+00> : vector<32x128xf32>
    %42 = tpu.matmul %39, %41, %cst_35 {dimension_numbers = #tpu.dot_dimension_numbers<[1], [0], [0], [1], [0, 0, 1, 1], [], []>} : vector<32x128xbf16>, vector<128x128xbf16>, vector<32x128xf32> -> vector<32x128xf32>
    %43 = arith.addf %36, %42 : vector<32x128xf32>
    %c1_36 = arith.constant 1 : index
    %c0_37 = arith.constant 0 : index
    %c0_38 = arith.constant 0 : index
    %44 = vector.load %arg11[%c1_36, %c0_37, %c0_38] : memref<6x10x128xf32, #tpu.memory_space<vmem>>, vector<4x8x128xf32>
    %45 = vector.shape_cast %44 : vector<4x8x128xf32> to vector<32x128xf32>
    %46 = arith.truncf %45 : vector<32x128xf32> to vector<32x128xbf16>
    %c3 = arith.constant 3 : index
    %c0_39 = arith.constant 0 : index
    %c0_40 = arith.constant 0 : index
    %47 = vector.load %arg7[%c3, %c0_39, %c0_40] : memref<9x128x128xbf16, #tpu.memory_space<vmem>>, vector<1x128x128xbf16>
    %48 = vector.shape_cast %47 : vector<1x128x128xbf16> to vector<128x128xbf16>
    %cst_41 = arith.constant dense<0.000000e+00> : vector<32x128xf32>
    %49 = tpu.matmul %46, %48, %cst_41 {dimension_numbers = #tpu.dot_dimension_numbers<[1], [0], [0], [1], [0, 0, 1, 1], [], []>} : vector<32x128xbf16>, vector<128x128xbf16>, vector<32x128xf32> -> vector<32x128xf32>
    %50 = arith.addf %43, %49 : vector<32x128xf32>
    %c1_42 = arith.constant 1 : index
    %c1_43 = arith.constant 1 : index
    %c0_44 = arith.constant 0 : index
    %51 = vector.load %arg11[%c1_42, %c1_43, %c0_44] : memref<6x10x128xf32, #tpu.memory_space<vmem>>, vector<4x8x128xf32>
    %52 = vector.shape_cast %51 : vector<4x8x128xf32> to vector<32x128xf32>
    %53 = arith.truncf %52 : vector<32x128xf32> to vector<32x128xbf16>
    %c4 = arith.constant 4 : index
    %c0_45 = arith.constant 0 : index
    %c0_46 = arith.constant 0 : index
    %54 = vector.load %arg7[%c4, %c0_45, %c0_46] : memref<9x128x128xbf16, #tpu.memory_space<vmem>>, vector<1x128x128xbf16>
    %55 = vector.shape_cast %54 : vector<1x128x128xbf16> to vector<128x128xbf16>
    %cst_47 = arith.constant dense<0.000000e+00> : vector<32x128xf32>
    %56 = tpu.matmul %53, %55, %cst_47 {dimension_numbers = #tpu.dot_dimension_numbers<[1], [0], [0], [1], [0, 0, 1, 1], [], []>} : vector<32x128xbf16>, vector<128x128xbf16>, vector<32x128xf32> -> vector<32x128xf32>
    %57 = arith.addf %50, %56 : vector<32x128xf32>
    %c1_48 = arith.constant 1 : index
    %c2_49 = arith.constant 2 : index
    %c0_50 = arith.constant 0 : index
    %58 = vector.load %arg11[%c1_48, %c2_49, %c0_50] : memref<6x10x128xf32, #tpu.memory_space<vmem>>, vector<4x8x128xf32>
    %59 = vector.shape_cast %58 : vector<4x8x128xf32> to vector<32x128xf32>
    %60 = arith.truncf %59 : vector<32x128xf32> to vector<32x128xbf16>
    %c5 = arith.constant 5 : index
    %c0_51 = arith.constant 0 : index
    %c0_52 = arith.constant 0 : index
    %61 = vector.load %arg7[%c5, %c0_51, %c0_52] : memref<9x128x128xbf16, #tpu.memory_space<vmem>>, vector<1x128x128xbf16>
    %62 = vector.shape_cast %61 : vector<1x128x128xbf16> to vector<128x128xbf16>
    %cst_53 = arith.constant dense<0.000000e+00> : vector<32x128xf32>
    %63 = tpu.matmul %60, %62, %cst_53 {dimension_numbers = #tpu.dot_dimension_numbers<[1], [0], [0], [1], [0, 0, 1, 1], [], []>} : vector<32x128xbf16>, vector<128x128xbf16>, vector<32x128xf32> -> vector<32x128xf32>
    %64 = arith.addf %57, %63 : vector<32x128xf32>
    %c2_54 = arith.constant 2 : index
    %c0_55 = arith.constant 0 : index
    %c0_56 = arith.constant 0 : index
    %65 = vector.load %arg11[%c2_54, %c0_55, %c0_56] : memref<6x10x128xf32, #tpu.memory_space<vmem>>, vector<4x8x128xf32>
    %66 = vector.shape_cast %65 : vector<4x8x128xf32> to vector<32x128xf32>
    %67 = arith.truncf %66 : vector<32x128xf32> to vector<32x128xbf16>
    %c6 = arith.constant 6 : index
    %c0_57 = arith.constant 0 : index
    %c0_58 = arith.constant 0 : index
    %68 = vector.load %arg7[%c6, %c0_57, %c0_58] : memref<9x128x128xbf16, #tpu.memory_space<vmem>>, vector<1x128x128xbf16>
    %69 = vector.shape_cast %68 : vector<1x128x128xbf16> to vector<128x128xbf16>
    %cst_59 = arith.constant dense<0.000000e+00> : vector<32x128xf32>
    %70 = tpu.matmul %67, %69, %cst_59 {dimension_numbers = #tpu.dot_dimension_numbers<[1], [0], [0], [1], [0, 0, 1, 1], [], []>} : vector<32x128xbf16>, vector<128x128xbf16>, vector<32x128xf32> -> vector<32x128xf32>
    %71 = arith.addf %64, %70 : vector<32x128xf32>
    %c2_60 = arith.constant 2 : index
    %c1_61 = arith.constant 1 : index
    %c0_62 = arith.constant 0 : index
    %72 = vector.load %arg11[%c2_60, %c1_61, %c0_62] : memref<6x10x128xf32, #tpu.memory_space<vmem>>, vector<4x8x128xf32>
    %73 = vector.shape_cast %72 : vector<4x8x128xf32> to vector<32x128xf32>
    %74 = arith.truncf %73 : vector<32x128xf32> to vector<32x128xbf16>
    %c7 = arith.constant 7 : index
    %c0_63 = arith.constant 0 : index
    %c0_64 = arith.constant 0 : index
    %75 = vector.load %arg7[%c7, %c0_63, %c0_64] : memref<9x128x128xbf16, #tpu.memory_space<vmem>>, vector<1x128x128xbf16>
    %76 = vector.shape_cast %75 : vector<1x128x128xbf16> to vector<128x128xbf16>
    %cst_65 = arith.constant dense<0.000000e+00> : vector<32x128xf32>
    %77 = tpu.matmul %74, %76, %cst_65 {dimension_numbers = #tpu.dot_dimension_numbers<[1], [0], [0], [1], [0, 0, 1, 1], [], []>} : vector<32x128xbf16>, vector<128x128xbf16>, vector<32x128xf32> -> vector<32x128xf32>
    %78 = arith.addf %71, %77 : vector<32x128xf32>
    %c2_66 = arith.constant 2 : index
    %c2_67 = arith.constant 2 : index
    %c0_68 = arith.constant 0 : index
    %79 = vector.load %arg11[%c2_66, %c2_67, %c0_68] : memref<6x10x128xf32, #tpu.memory_space<vmem>>, vector<4x8x128xf32>
    %80 = vector.shape_cast %79 : vector<4x8x128xf32> to vector<32x128xf32>
    %81 = arith.truncf %80 : vector<32x128xf32> to vector<32x128xbf16>
    %c8 = arith.constant 8 : index
    %c0_69 = arith.constant 0 : index
    %c0_70 = arith.constant 0 : index
    %82 = vector.load %arg7[%c8, %c0_69, %c0_70] : memref<9x128x128xbf16, #tpu.memory_space<vmem>>, vector<1x128x128xbf16>
    %83 = vector.shape_cast %82 : vector<1x128x128xbf16> to vector<128x128xbf16>
    %cst_71 = arith.constant dense<0.000000e+00> : vector<32x128xf32>
    %84 = tpu.matmul %81, %83, %cst_71 {dimension_numbers = #tpu.dot_dimension_numbers<[1], [0], [0], [1], [0, 0, 1, 1], [], []>} : vector<32x128xbf16>, vector<128x128xbf16>, vector<32x128xf32> -> vector<32x128xf32>
    %85 = arith.addf %78, %84 : vector<32x128xf32>
    %c0_72 = arith.constant 0 : index
    %c0_73 = arith.constant 0 : index
    %86 = vector.load %arg8[%c0_72, %c0_73] : memref<1x128xf32, #tpu.memory_space<vmem>>, vector<1x128xf32>
    %87 = vector.broadcast %86 : vector<1x128xf32> to vector<32x128xf32>
    %88 = arith.addf %85, %87 : vector<32x128xf32>
    %cst_74 = arith.constant 1.000000e+00 : f32
    %89 = vector.broadcast %cst_74 : f32 to vector<1x32xf32>
    %cst_75 = arith.constant dense<0.000000e+00> : vector<1x128xf32>
    %90 = tpu.matmul %89, %88, %cst_75 {dimension_numbers = #tpu.dot_dimension_numbers<[1], [0], [0], [1], [0, 0, 1, 1], [], []>} : vector<1x32xf32>, vector<32x128xf32>, vector<1x128xf32> -> vector<1x128xf32>
    %91 = arith.mulf %88, %88 : vector<32x128xf32>
    %cst_76 = arith.constant dense<0.000000e+00> : vector<1x128xf32>
    %92 = tpu.matmul %89, %91, %cst_76 {dimension_numbers = #tpu.dot_dimension_numbers<[1], [0], [0], [1], [0, 0, 1, 1], [], []>} : vector<1x32xf32>, vector<32x128xf32>, vector<1x128xf32> -> vector<1x128xf32>
    %93 = tpu.concatenate %90, %92 in 0 : vector<1x128xf32>, vector<1x128xf32> -> vector<2x128xf32>
    %c0_77 = arith.constant 0 : index
    %c0_78 = arith.constant 0 : index
    %c0_79 = arith.constant 0 : index
    %c0_80 = arith.constant 0 : index
    %94 = vector.load %arg10[%c0_77, %c0_78, %c0_79, %c0_80] : memref<1x1x2x128xf32, #tpu.memory_space<vmem>>, vector<1x1x2x128xf32>
    %95 = vector.shape_cast %94 : vector<1x1x2x128xf32> to vector<2x128xf32>
    %96 = vector.shape_cast %93 : vector<2x128xf32> to vector<1x1x2x128xf32>
    tpu.vector_store %arg10[%c0_77, %c0_78, %c0_79, %c0_80], %96 {strides = array<i32>} : memref<1x1x2x128xf32, #tpu.memory_space<vmem>>, vector<1x1x2x128xf32>,
    %97 = vector.shape_cast %88 : vector<32x128xf32> to vector<4x8x128xf32>
    %98 = arith.truncf %97 : vector<4x8x128xf32> to vector<4x8x128xbf16>
    %c0_81 = arith.constant 0 : index
    %c0_82 = arith.constant 0 : index
    %c0_83 = arith.constant 0 : index
    %c0_84 = arith.constant 0 : index
    %99 = vector.load %arg9[%c0_81, %c0_82, %c0_83, %c0_84] : memref<1x4x8x128xbf16, #tpu.memory_space<vmem>>, vector<1x4x8x128xbf16>
    %100 = vector.shape_cast %99 : vector<1x4x8x128xbf16> to vector<4x8x128xbf16>
    %101 = vector.shape_cast %98 : vector<4x8x128xbf16> to vector<1x4x8x128xbf16>
    tpu.vector_store %arg9[%c0_81, %c0_82, %c0_83, %c0_84], %101 {strides = array<i32>} : memref<1x4x8x128xbf16, #tpu.memory_space<vmem>>, vector<1x4x8x128xbf16>,
    return
  }
  func.func @transform_0(%arg0: i32, %arg1: i32) -> (i32, i32, i32, i32) {
    %c0_i32 = arith.constant 0 : i32
    %c0_i32_0 = arith.constant 0 : i32
    %c0_i32_1 = arith.constant 0 : i32
    return %arg0, %arg1, %c0_i32, %c0_i32_0 : i32, i32, i32, i32
  }
  func.func @transform_1(%arg0: i32, %arg1: i32) -> (i32, i32, i32, i32) {
    %c4_i32 = arith.constant 4 : i32
    %0 = arith.muli %arg1, %c4_i32 : i32
    %c1_i32 = arith.constant 1 : i32
    %1 = arith.subi %0, %c1_i32 : i32
    %c0_i32 = arith.constant 0 : i32
    %2 = arith.maxsi %1, %c0_i32 : i32
    %c0_i32_0 = arith.constant 0 : i32
    %c0_i32_1 = arith.constant 0 : i32
    %c0_i32_2 = arith.constant 0 : i32
    return %arg0, %2, %c0_i32_0, %c0_i32_1 : i32, i32, i32, i32
  }
  func.func @transform_2(%arg0: i32, %arg1: i32) -> (i32, i32, i32, i32) {
    %c1_i32 = arith.constant 1 : i32
    %0 = arith.addi %arg1, %c1_i32 : i32
    %c4_i32 = arith.constant 4 : i32
    %1 = arith.muli %0, %c4_i32 : i32
    %c7_i32 = arith.constant 7 : i32
    %2 = arith.minsi %1, %c7_i32 : i32
    %c0_i32 = arith.constant 0 : i32
    %c0_i32_0 = arith.constant 0 : i32
    %c0_i32_1 = arith.constant 0 : i32
    return %arg0, %2, %c0_i32, %c0_i32_0 : i32, i32, i32, i32
  }
  func.func @transform_3(%arg0: i32, %arg1: i32) -> (i32, i32) {
    %c0_i32 = arith.constant 0 : i32
    %c0_i32_0 = arith.constant 0 : i32
    %c0_i32_1 = arith.constant 0 : i32
    return %c0_i32, %c0_i32_0 : i32, i32
  }
  func.func @transform_4(%arg0: i32, %arg1: i32) -> (i32, i32) {
    %c0_i32 = arith.constant 0 : i32
    %c0_i32_0 = arith.constant 0 : i32
    %c0_i32_1 = arith.constant 0 : i32
    return %c0_i32, %c0_i32_0 : i32, i32
  }
  func.func @transform_5(%arg0: i32, %arg1: i32) -> (i32, i32, i32) {
    %c0_i32 = arith.constant 0 : i32
    %c0_i32_0 = arith.constant 0 : i32
    %c0_i32_1 = arith.constant 0 : i32
    %c0_i32_2 = arith.constant 0 : i32
    return %c0_i32, %c0_i32_0, %c0_i32_1 : i32, i32, i32
  }
  func.func @transform_6(%arg0: i32, %arg1: i32) -> (i32, i32) {
    %c0_i32 = arith.constant 0 : i32
    %c0_i32_0 = arith.constant 0 : i32
    %c0_i32_1 = arith.constant 0 : i32
    return %c0_i32, %c0_i32_0 : i32, i32
  }
  func.func @transform_7(%arg0: i32, %arg1: i32) -> (i32, i32, i32, i32) {
    %c0_i32 = arith.constant 0 : i32
    %c0_i32_0 = arith.constant 0 : i32
    %c0_i32_1 = arith.constant 0 : i32
    return %arg0, %arg1, %c0_i32, %c0_i32_0 : i32, i32, i32, i32
  }
  func.func @transform_8(%arg0: i32, %arg1: i32) -> (i32, i32, i32, i32) {
    %c0_i32 = arith.constant 0 : i32
    %c0_i32_0 = arith.constant 0 : i32
    %c0_i32_1 = arith.constant 0 : i32
    return %arg0, %arg1, %c0_i32, %c0_i32_0 : i32, i32, i32, i32
  }
}

module attributes {stable_mosaic.version = 11 : i64} {
  func.func @_bn2_relu_kernel(%arg0: i32, %arg1: i32, %arg2: memref<1x4x8x128xbf16, #tpu.memory_space<vmem>>, %arg3: memref<1x128xf32, #tpu.memory_space<vmem>>, %arg4: memref<1x128xf32, #tpu.memory_space<vmem>>, %arg5: memref<1x4x8x128xbf16, #tpu.memory_space<vmem>>) attributes {dimension_semantics = [#tpu.dimension_semantics<parallel>, #tpu.dimension_semantics<parallel>], iteration_bounds = array<i64: 2, 2>, scalar_prefetch = 0 : i64, scratch_operands = 0 : i64, tpu.core_type = #tpu.core_type<tc>, window_params = [{transform_indices = @transform_0, window_bounds = array<i64: 1, 4, 8, 128>}, {pipeline_mode = #tpu.pipeline_mode<synchronous>, transform_indices = @transform_1, window_bounds = array<i64: 1, 128>}, {pipeline_mode = #tpu.pipeline_mode<synchronous>, transform_indices = @transform_2, window_bounds = array<i64: 1, 128>}, {transform_indices = @transform_3, window_bounds = array<i64: 1, 4, 8, 128>}]} {
    %c0 = arith.constant 0 : index
    %c0_0 = arith.constant 0 : index
    %c0_1 = arith.constant 0 : index
    %c0_2 = arith.constant 0 : index
    %0 = vector.load %arg2[%c0, %c0_0, %c0_1, %c0_2] : memref<1x4x8x128xbf16, #tpu.memory_space<vmem>>, vector<1x4x8x128xbf16>
    %1 = vector.shape_cast %0 : vector<1x4x8x128xbf16> to vector<4x8x128xbf16>
    %2 = arith.extf %1 : vector<4x8x128xbf16> to vector<4x8x128xf32>
    %c0_3 = arith.constant 0 : index
    %c0_4 = arith.constant 0 : index
    %3 = vector.load %arg3[%c0_3, %c0_4] : memref<1x128xf32, #tpu.memory_space<vmem>>, vector<1x128xf32>
    %4 = vector.shape_cast %3 : vector<1x128xf32> to vector<1x1x128xf32>
    %5 = vector.broadcast %4 : vector<1x1x128xf32> to vector<4x8x128xf32>
    %6 = arith.mulf %2, %5 : vector<4x8x128xf32>
    %c0_5 = arith.constant 0 : index
    %c0_6 = arith.constant 0 : index
    %7 = vector.load %arg4[%c0_5, %c0_6] : memref<1x128xf32, #tpu.memory_space<vmem>>, vector<1x128xf32>
    %8 = vector.shape_cast %7 : vector<1x128xf32> to vector<1x1x128xf32>
    %9 = vector.broadcast %8 : vector<1x1x128xf32> to vector<4x8x128xf32>
    %10 = arith.addf %6, %9 : vector<4x8x128xf32>
    %cst = arith.constant 0.000000e+00 : f32
    %11 = vector.broadcast %cst : f32 to vector<4x8x128xf32>
    %12 = arith.maximumf %10, %11 : vector<4x8x128xf32>
    %13 = arith.truncf %12 : vector<4x8x128xf32> to vector<4x8x128xbf16>
    %c0_7 = arith.constant 0 : index
    %c0_8 = arith.constant 0 : index
    %c0_9 = arith.constant 0 : index
    %c0_10 = arith.constant 0 : index
    %14 = vector.load %arg5[%c0_7, %c0_8, %c0_9, %c0_10] : memref<1x4x8x128xbf16, #tpu.memory_space<vmem>>, vector<1x4x8x128xbf16>
    %15 = vector.shape_cast %14 : vector<1x4x8x128xbf16> to vector<4x8x128xbf16>
    %16 = vector.shape_cast %13 : vector<4x8x128xbf16> to vector<1x4x8x128xbf16>
    tpu.vector_store %arg5[%c0_7, %c0_8, %c0_9, %c0_10], %16 {strides = array<i32>} : memref<1x4x8x128xbf16, #tpu.memory_space<vmem>>, vector<1x4x8x128xbf16>,
    return
  }
  func.func @transform_0(%arg0: i32, %arg1: i32) -> (i32, i32, i32, i32) {
    %c0_i32 = arith.constant 0 : i32
    %c0_i32_0 = arith.constant 0 : i32
    %c0_i32_1 = arith.constant 0 : i32
    return %arg0, %arg1, %c0_i32, %c0_i32_0 : i32, i32, i32, i32
  }
  func.func @transform_1(%arg0: i32, %arg1: i32) -> (i32, i32) {
    %c0_i32 = arith.constant 0 : i32
    %c0_i32_0 = arith.constant 0 : i32
    %c0_i32_1 = arith.constant 0 : i32
    return %c0_i32, %c0_i32_0 : i32, i32
  }
  func.func @transform_2(%arg0: i32, %arg1: i32) -> (i32, i32) {
    %c0_i32 = arith.constant 0 : i32
    %c0_i32_0 = arith.constant 0 : i32
    %c0_i32_1 = arith.constant 0 : i32
    return %c0_i32, %c0_i32_0 : i32, i32
  }
  func.func @transform_3(%arg0: i32, %arg1: i32) -> (i32, i32, i32, i32) {
    %c0_i32 = arith.constant 0 : i32
    %c0_i32_0 = arith.constant 0 : i32
    %c0_i32_1 = arith.constant 0 : i32
    return %arg0, %arg1, %c0_i32, %c0_i32_0 : i32, i32, i32, i32
  }
}

</mosaic_0001>

<bundles_post_ra>
// kernel: _lambda_.5
= control target key start
LH: loop header
LB: loop body
LE: loop exit
PB: predicated region body
PF: predicated region fallthrough
CT: control target
= control target key end

     0   :  { %s477_s12 = smov 0   ;;  %s479_s13 = smov 0   ;;  %s534_s0 = inlined_call_operand.vmem [shape: bf16[2,8,8,128], index: 0, kind: input, shape index: {}, may-alias: {0,3}]   ;;  %s535_s1 = inlined_call_operand.vmem [shape: f32[1,128], index: 1, kind: input, shape index: {}]   ;;  %s536_s2 = inlined_call_operand.vmem [shape: f32[1,128], index: 2, kind: input, shape index: {}]   ;;  %s537_s3 = inlined_call_operand.vmem [shape: bf16[2,8,8,128], index: 3, kind: output, shape index: {}, may-alias: {0,3}]  }
   0x1   :  { %s481_s14 = smov 0   ;;  %s483_s15 = smov 0  }
   0x2   :  { %s485_s16 = smov 0  }
   0x3 LB: > { %s22_s17 = sadd.s32 1, %s447_s14  ;;  %s25_s18 = sadd.s32 1, %s451_s15  ;;  %s455_s16 = sphi %s485_s16, %s13_s16   ;;  %s451_s15 = sphi %s483_s15, %s541_s15   ;;  %s447_s14 = sphi %s481_s14, %s540_s14   ;;  %s443_s13 = sphi %s479_s13, %s539_s13   ;;  %s439_s12 = sphi %s477_s12, %s538_s12  }
   0x4   : > { %p23_p0 = scmp.ge.s32.totalorder %s22_s17, 2  ;;  %p346_p1 = scmp.ge.s32.totalorder %s455_s16, 1 }
   0x5   : > { %p158_p2 = scmp.lt.s32.totalorder %s455_s16, 5 }
   0x6   : > { %s543_s17 = smov (%p23_p0, %s22_s17), 0  ;;  %s545_s18 = smov (!%p23_p0, %s25_s18), %s451_s15 }
   0x7   : > { %p159_p3 = pnand %p346_p1, %p158_p2  ;;  %p27_p4 = scmp.ge.s32.totalorder %s545_s18, 2 }
   0x8   : > { %s347_s19 = sshll.u32 (!%p159_p3), %s439_s12, 2  ;;  %p191_p5 = scmp.lt.s32.totalorder (!%p159_p3), %s443_s13, 1 }
   0x9   : > { %s547_s18 = smov (%p27_p4, %s545_s18), 0  ;;  %162 = sbr.rel (%p159_p3) target bundleno = 31 (0x1f), region = 32 }
   0xa   : > { %p193_p6 = scmp.lt.s32.totalorder (!%p159_p3), %s347_s19, 7 }
   0xe   : > { %s549_s13 = smov (!%p191_p5, %s443_s13), 1  ;;  %s551_s19 = smov (!%p193_p6, %s347_s19), 7  ;;  %v353_v2 = vld [vmem:[%s535_s1] ss:$0 sm:$0xff] }
   0xf   : > { %s348_s20 = sshll.u32 %s549_s13, 3  ;;  %v354_v7 = vld [vmem:[%s536_s2] ss:$0 sm:$0xff] }
  0x10   : > { %s196_s21 = sadd.s32 %s348_s20, %s551_s19 }
  0x11   : > { %s349_s22 = sshll.u32 %s196_s21, 2 }
  0x12   : > { %s198_s25 = scalar_lea.vmem %s534_s0, %s349_s22  ;;  %s208_s5 = scalar_lea.vmem %s537_s3, %s349_s22 }
  0x13   : > { %v358_v0 = vld [vmem:[%s198_s25] sm:$0xff]   ;;  %v375_v1 = vld [vmem:[%s198_s25 + $0x8] sm:$0xff]  }
  0x14   : > { %v359_v3 = vunpack.c.l.bf16 %v358_v0  ;;  %v360_v4 = vunpack.c.h.bf16 %v358_v0  ;;  %v363_v5 = vunpack.c.l.bf16 %v375_v1  ;;  %v364_v6 = vunpack.c.h.bf16 %v375_v1 }
  0x16   : > { %v225_v8 = vmul.f32 %v359_v3, %v353_v2  ;;  %v226_v9 = vmul.f32 %v360_v4, %v353_v2  ;;  %v227_v10 = vmul.f32 %v363_v5, %v353_v2  ;;  %v228_v11 = vmul.f32 %v364_v6, %v353_v2 }
  0x18   : > { %v236_v12 = vadd.f32 %v354_v7, %v225_v8  ;;  %v237_v13 = vadd.f32 %v354_v7, %v226_v9  ;;  %v238_v14 = vadd.f32 %v354_v7, %v227_v10  ;;  %v239_v15 = vadd.f32 %v354_v7, %v228_v11 }
  0x1a   : > { %v240_v16 = vmax.f32 %v236_v12, 0.0  ;;  %v241_v17 = vmax.f32 %v237_v13, 0.0  ;;  %v242_v18 = vmax.f32 %v238_v14, 0.0  ;;  %v243_v19 = vmax.f32 %v239_v15, 0.0 }
  0x1c   : > { %v368_v20 = vpack.c.bf16 %v241_v17, %v240_v16  ;;  %v373_v21 = vpack.c.bf16 %v243_v19, %v242_v18 }
  0x1e   : > { %369 = vst [vmem:[%s208_s5] sm:$0xff] %v368_v20   ;;  %376 = vst [vmem:[%s208_s5 + $0x8] sm:$0xff] %v373_v21  }
  0x1f PF: > { %s13_s16 = sadd.s32 1, %s455_s16   ;;  %s538_s12 = smov %s447_s14 }
  0x20   : > { %p10_p7 = scmp.ge.s32.totalorder %s13_s16, 6   ;;  %s539_s13 = smov %s451_s15 }
  0x21   : > { %s540_s14 = smov %s543_s17  ;;  %s541_s15 = smov %s547_s18 }
  0x22   :  { %12 = sbr.rel (!%p10_p7) target bundleno = 3 (0x3), region = 62 }

// kernel: _lambda_.3
= control target key start
LH: loop header
LB: loop body
LE: loop exit
PB: predicated region body
PF: predicated region fallthrough
CT: control target
= control target key end

     0   :  { %s1834_s21 = smov 0   ;;  %s1836_s22 = smov 0   ;;  %s2043_s0 = inlined_call_operand.vmem [shape: f32[2,8,2,8,8], index: 0, kind: input, shape index: {}, may-alias: {0,1,2}]   ;;  %s2044_s1 = inlined_call_operand.vmem [shape: f32[2,8,2,8,8], index: 1, kind: input, shape index: {}, may-alias: {0,1,2}]   ;;  %s2045_s2 = inlined_call_operand.vmem [shape: f32[2,8,2,8,8], index: 2, kind: input, shape index: {}, may-alias: {0,1,2}]   ;;  %s2046_s3 = inlined_call_operand.vmem [shape: bf16[9,4,128], index: 3, kind: input, shape index: {}]   ;;  %s2047_s4 = inlined_call_operand.vmem [shape: f32[1,128], index: 4, kind: input, shape index: {}]   ;;  %s2048_s5 = inlined_call_operand.vmem [shape: bf16[2,8,8,128], index: 5, kind: output, shape index: {0}]   ;;  %s2049_s6 = inlined_call_operand.vmem [shape: f32[2,2,2,128], index: 6, kind: output, shape index: {1}]  }
   0x1   :  { %s1838_s23 = smov 0   ;;  %s1840_s24 = smov 0  }
   0x2   :  { %s1842_s25 = smov 0  }
   0x3 LB: > { %s26_s26 = sadd.s32 1, %s1783_s23  ;;  %s29_s27 = sadd.s32 1, %s1787_s24  ;;  %s1791_s25 = sphi %s1842_s25, %s17_s25   ;;  %s1787_s24 = sphi %s1840_s24, %s2054_s24   ;;  %s1783_s23 = sphi %s1838_s23, %s2053_s23   ;;  %s1779_s22 = sphi %s1836_s22, %s2052_s22   ;;  %s1775_s21 = sphi %s1834_s21, %s2051_s21  }
   0x4   : > { %p27_p0 = scmp.ge.s32.totalorder %s26_s26, 2  ;;  %p1506_p1 = scmp.ge.s32.totalorder %s1791_s25, 1 }
   0x5   : > { %p303_p2 = scmp.lt.s32.totalorder %s1791_s25, 5 }
   0x6   : > { %s2056_s26 = smov (%p27_p0, %s26_s26), 0  ;;  %s2058_s27 = smov (!%p27_p0, %s29_s27), %s1787_s24 }
   0x7   : > { %p304_p3 = pnand %p1506_p1, %p303_p2  ;;  %p31_p4 = scmp.ge.s32.totalorder %s2058_s27, 2 }
   0x8   : > { %s1869_s28 = sshll.u32 (!%p304_p3), %s1775_s21, 2  ;;  %p377_p5 = scmp.lt.s32.totalorder (!%p304_p3), %s1779_s22, 1 }
   0x9   : > { %s2060_s27 = smov (%p31_p4, %s2058_s27), 0  ;;  %307 = sbr.rel (%p304_p3) target bundleno = 843 (0x34b), region = 40 }
   0xa   : > { %p379_p6 = scmp.lt.s32.totalorder (!%p304_p3), %s1869_s28, 7  ;;  %s1512_s29 = sadd.s32 (!%p304_p3), 4294967295, %s1869_s28 }
   0xb   : > { %p389_p7 = scmp.gt.s32.totalorder (!%p304_p3), %s1512_s29, 0  ;;  %p1513_p8 = scmp.lt.s32.totalorder (!%p304_p3), %s1512_s29, 7 }
   0xc   : > { %s1573_s10 = sadd.s32 (!%p304_p3), 4, %s1869_s28  ;;  %p433_p10 = scmp.lt.s32.totalorder (!%p304_p3), %s1775_s21, 1 }
   0xd   : > { %p1902_p9 = scmp.lt.s32.totalorder (!%p304_p3), %s1573_s10, 7  ;;  %p1533_p11 = scmp.le.s32.totalorder (!%p304_p3), %s1775_s21, 0 }
   0xe   : > { %vm440_vm0 = vcmask 31744   ;;  %vm442_vm1 = vcmask 25600   ;;  %v1793_v0 = vmov 0.0   ;;  %s2062_s22 = smov (!%p377_p5, %s1779_s22), 1  ;;  %s2064_s29 = smov (!%p389_p7, %s1512_s29), 0 }
   0xf   : > { %441 = vst.msk [vmem:[#allocation2] sm:$0xff] %vm440_vm0, %v1793_v0  ;;  %448 = vst.msk [vmem:[#allocation2 + $0x30] sm:$0xff] %vm440_vm0, %v1793_v0  ;;  %s380_s30 = scalar_select %p379_p6, %s1869_s28, 7 }
  0x10   : > { %443 = vst.msk [vmem:[#allocation2 + $0x8] sm:$0x3] %vm442_vm1, %v1793_v0  ;;  %449 = vst.msk [vmem:[#allocation2 + $0x38] sm:$0x3] %vm442_vm1, %v1793_v0  ;;  %s1509_s7 = sshll.u32 %s2062_s22, 4  ;;  %s1529_s16 = sshll.u32 %s2062_s22, 3 }
  0x11   : > { %452 = vst.msk [vmem:[#allocation2 + $0x50] sm:$0xff] %vm440_vm0, %v1793_v0  ;;  %444 = vst.msk [vmem:[#allocation2 + $0x10] sm:$0xff] %vm440_vm0, %v1793_v0  ;;  %s1508_s8 = sshll.u32 %s380_s30, 1  ;;  %s2066_s10 = smov (!%p1902_p9, %s1573_s10), 7 }
  0x12   : > { %453 = vst.msk [vmem:[#allocation2 + $0x58] sm:$0x3] %vm442_vm1, %v1793_v0  ;;  %445 = vst.msk [vmem:[#allocation2 + $0x18] sm:$0x3] %vm442_vm1, %v1793_v0  ;;  %s383_s9 = sadd.s32 %s1509_s7, %s1508_s8  ;;  %s2068_s29 = smov (!%p1513_p8, %s2064_s29), 7 }
  0x13   : > { %446 = vst.msk [vmem:[#allocation2 + $0x20] sm:$0xff] %vm440_vm0, %v1793_v0  ;;  %450 = vst.msk [vmem:[#allocation2 + $0x40] sm:$0xff] %vm440_vm0, %v1793_v0  ;;  %s1510_s11 = sshll.u32 %s383_s9, 3  ;;  %s2070_s10 = smov (!%p1902_p9, %s2066_s10), 7 }
  0x14   : > { %447 = vst.msk [vmem:[#allocation2 + $0x28] sm:$0x3] %vm442_vm1, %v1793_v0  ;;  %451 = vst.msk [vmem:[#allocation2 + $0x48] sm:$0x3] %vm442_vm1, %v1793_v0  ;;  %s385_s15 = scalar_lea.vmem %s2043_s0, %s1510_s11  ;;  %s1518_s17 = sshll.u32 %s2068_s29, 1 }
  0x15   : > { %v458_v1 = vld [vmem:[%s385_s15 + $0x20] sm:$0xff]  ;;  %s427_s18 = sadd.s32 %s1529_s16, %s380_s30  ;;  %v459_v2 = vld [vmem:[%s385_s15 + $0x28] sm:$0xff]  ;;  %s397_s19 = sadd.s32 %s1518_s17, %s1509_s7  ;;  %v460_v7 = vld [vmem:[%s385_s15 + $0x30] sm:$0xff] }
  0x16   : > { %v454_v3 = vld [vmem:[%s385_s15] sm:$0xff]  ;;  %v455_v4 = vld [vmem:[%s385_s15 + $0x8] sm:$0xff]  ;;  %s1525_s20 = sshll.u32 %s2070_s10, 1  ;;  %s1520_s28 = sshll.u32 %s397_s19, 3  ;;  %v464_v5 = vmax.f32 %v458_v1, %v459_v2  ;;  %v461_v8 = vld [vmem:[%s385_s15 + $0x38] sm:$0xff] }
  0x17   : > { %s414_s8 = sadd.s32 %s1525_s20, %s1509_s7  ;;  %s1917_s13 = scalar_lea.vmem %s2044_s1, %s1520_s28  ;;  %v462_v6 = vmax.f32 %v454_v3, %v455_v4  ;;  %v456_v9 = vld [vmem:[%s385_s15 + $0x10] sm:$0xff]  ;;  %v457_v10 = vld [vmem:[%s385_s15 + $0x18] sm:$0xff]  ;;  %v465_v11 = vmax.f32 %v460_v7, %v461_v8 }
  0x18   : > { %s1527_s12 = sshll.u32 %s414_s8, 3  ;;  %s1530_s16 = sshll.u32 %s427_s18, 2  ;;  %v463_v12 = vmax.f32 %v456_v9, %v457_v10 }
  0x19   : > { %s1922_s14 = scalar_lea.vmem %s2045_s2, %s1527_s12  ;;  %s1927_s17 = scalar_lea.vmem %s2048_s5, %s1530_s16 }
  0x1a   : > { %s1531_s19 = sshll.u32 %s2062_s22, 1  ;;  %s1794_s28 = smov 124  }
  0x1b   : > { %s434_s20 = scalar_select %p433_p10, %s1775_s21, 1  ;;  %474 = vrot.lane.b32.xlu1 %v464_v5, %s1794_s28  ;;  %470 = vrot.lane.b32.xlu0 %v462_v6, %s1794_s28 }
  0x1c   : > { %s1795_s22 = smov (!%p1533_p11), 124  }
  0x1d   : > { %s436_s8 = sadd.s32 %s1531_s19, %s434_s20 }
  0x1e   : > { %s1532_s9 = sshll.u32 %s436_s8, 1 }
  0x1f   : > { %s1935_s12 = scalar_lea.vmem %s2049_s6, %s1532_s9  ;;  %476 = vrot.lane.b32.xlu1 %v465_v11, %s1794_s28  ;;  %472 = vrot.lane.b32.xlu0 %v463_v12, %s1794_s28 }
  0x8d   : > { %v475_v13 = vpop.permute.xlu1 %474  ;;  %v471_v14 = vpop.permute.xlu0 %470 }
  0x8e   : > { %v484_v15 = vmax.f32 %v464_v5, %v475_v13  ;;  %v482_v16 = vmax.f32 %v462_v6, %v471_v14 }
  0x90   : > { %489 = vst.msk [vmem:[#allocation2 + $0x31] sm:$0xff] %vm440_vm0, %v484_v15  ;;  %487 = vst.msk [vmem:[#allocation2 + $0x11] sm:$0xff] %vm440_vm0, %v482_v16  ;;  %494 = sbr.rel (%p1533_p11) target bundleno = 270 (0x10e), region = 44 }
  0x91   : > { %v477_v17 = vpop.permute.xlu1 %476  ;;  %v473_v18 = vpop.permute.xlu0 %472 }
  0x92   : > { %v485_v19 = vmax.f32 %v465_v11, %v477_v17  ;;  %v483_v20 = vmax.f32 %v463_v12, %v473_v18 }
  0x94   : > { %490 = vst.msk [vmem:[#allocation2 + $0x41] sm:$0xff] %vm440_vm0, %v485_v19  ;;  %488 = vst.msk [vmem:[#allocation2 + $0x21] sm:$0xff] %vm440_vm0, %v483_v20 }
  0x95   : > { %v495_v21 = vld [vmem:[%s1917_s13] sm:$0xff]  ;;  %v496_v22 = vld [vmem:[%s1917_s13 + $0x8] sm:$0xff] }
  0x96   : > { %v497_v23 = vmax.f32 %v495_v21, %v496_v22 }
  0x98   : > { %499 = vrot.lane.b32.xlu0 %v497_v23, %s1795_s22 }
 0x10a   : > { %v500_v24 = vpop.permute.xlu0 %499 }
 0x10b   : > { %v502_v25 = vmax.f32 %v497_v23, %v500_v24 }
 0x10d   : > { %503 = vst.msk [vmem:[#allocation2 + $0x1] sm:$0xff] %vm440_vm0, %v502_v25 }
 0x10e PF: > { %p1534_p12 = scmp.ge.s32.totalorder %s1775_s21, 1 }
 0x10f   : > { %s1796_s15 = smov (!%p1534_p12), 124  }
 0x110   : > { %507 = sbr.rel (%p1534_p12) target bundleno = 398 (0x18e), region = 48 }
 0x115   : > { %v508_v26 = vld [vmem:[%s1922_s14] sm:$0xff]  ;;  %v509_v27 = vld [vmem:[%s1922_s14 + $0x8] sm:$0xff] }
 0x116   : > { %v510_v28 = vmax.f32 %v508_v26, %v509_v27 }
 0x118   : > { %512 = vrot.lane.b32.xlu0 %v510_v28, %s1796_s15 }
 0x18a   : > { %v513_v29 = vpop.permute.xlu0 %512 }
 0x18b   : > { %v515_v30 = vmax.f32 %v510_v28, %v513_v29 }
 0x18d   : > { %517 = vst.msk [vmem:[#allocation2 + $0x51] sm:$0xff] %vm440_vm0, %v515_v30 }
 0x18e PF: > { %v1535_v31 = vld [vmem:[%s2046_s3 + $0x2] sm:$0x3]  ;;  %vm539_vm2 = vcmask 1041408   ;;  %v524_v32 = vld [vmem:[%s2046_s3] sm:$0x3]  ;;  %v526_v36 = vld [vmem:[#allocation2 + $0x11] sm:$0xff] }
 0x18f   : > { %v525_v33 = vld [vmem:[#allocation2 + $0x1] sm:$0xff]  ;;  %1698 = vmatprep.subr.msk.bf16.mxu0 %vm539_vm2, %v1535_v31  ;;  %1699 = vmatprep.subr.msk.bf16.mxu1 %vm539_vm2, %v524_v32  ;;  %v541_v34 = vsel %vm539_vm2, %v1535_v31, 0  ;;  %v599_v35 = vsel %vm539_vm2, %v524_v32, 0  ;;  %v519_v38 = vld [vmem:[#allocation2 + $0x10] sm:$0xff]  ;;  %v1549_v58 = vld [vmem:[%s2046_s3 + $0xa] sm:$0x3] }
 0x190   : > { %v518_v37 = vld [vmem:[#allocation2] sm:$0xff]  ;;  %1623 = vmatpush3.bf16.msra.mxu0 %v541_v34  ;;  %1629 = vmatpush3.bf16.msra.mxu1 %v599_v35  ;;  %v529_v39 = vpack.c.bf16 %v526_v36, %v525_v33  ;;  %v528_v42 = vld [vmem:[#allocation2 + $0x31] sm:$0xff]  ;;  %v1546_v57 = vld [vmem:[%s2046_s3 + $0x8] sm:$0x3]  ;;  %v875_v1 = vsel %vm539_vm2, %v1549_v58, 0  ;;  %vm1797_vm3 = vmmov 0  }
 0x191   : > { %v522_v40 = vpack.c.bf16 %v519_v38, %v518_v37  ;;  %v527_v41 = vld [vmem:[#allocation2 + $0x21] sm:$0xff]  ;;  %v521_v45 = vld [vmem:[#allocation2 + $0x30] sm:$0xff]  ;;  %v805_v62 = vsel %vm539_vm2, %v1546_v57, 0  ;;  %v1552_v3 = vld [vmem:[%s2046_s3 + $0xc] sm:$0x3]  ;;  %vm1152_vm4 = vcmask 261120  }
 0x192   : > { %v520_v43 = vld [vmem:[#allocation2 + $0x20] sm:$0xff]  ;;  %v530_v44 = vpack.c.bf16 %v528_v42, %v527_v41  ;;  %1624 = vmatprep.mubr.msk.bf16.mxu0 %vm440_vm0, %v529_v39  ;;  %v651_v51 = vld [vmem:[#allocation2 + $0x12] sm:$0xff]  ;;  %v794_v63 = vpack.c.bf16 %v527_v41, %v526_v36  ;;  %v1555_v5 = vld [vmem:[%s2046_s3 + $0xe] sm:$0x3]  ;;  %v946_v9 = vsel %vm539_vm2, %v1552_v3, 0  ;;  %vm1303_vm5 = vcmask 1040384  }
 0x193   : > { %v1540_v46 = vld [vmem:[%s2046_s3 + $0x4] sm:$0x3]  ;;  %v1543_v47 = vld [vmem:[%s2046_s3 + $0x6] sm:$0x3]  ;;  %1630 = vmatprep.mubr.msk.bf16.mxu1 %vm440_vm0, %v522_v40  ;;  %v523_v48 = vpack.c.bf16 %v521_v45, %v520_v43  ;;  %v724_v52 = vpack.c.bf16 %v520_v43, %v519_v38  ;;  %v653_v56 = vld [vmem:[#allocation2 + $0x32] sm:$0xff]  ;;  %v1016_v10 = vsel %vm539_vm2, %v1555_v5, 0 }
 0x194   : > { %v665_v49 = vsel %vm539_vm2, %v1540_v46, 0  ;;  %v650_v50 = vld [vmem:[#allocation2 + $0x2] sm:$0xff]  ;;  %1625 = vmatmul.mubr.msk.bf16.vlgmr.msra.gmra.mxu0 %vm440_vm0, %v530_v44  ;;  %1700 = vmatprep.subr.msk.bf16.mxu0 %vm539_vm2, %v1540_v46  ;;  %v735_v53 = vsel %vm539_vm2, %v1543_v47, 0  ;;  %v1558_v11 = vld [vmem:[%s2046_s3 + $0x10] sm:$0x3]  ;;  %v1074_v17 = vld [vmem:[#allocation2 + $0x52] sm:$0xff] }
 0x195   : > { %v654_v54 = vpack.c.bf16 %v651_v51, %v650_v50  ;;  %v652_v55 = vld [vmem:[#allocation2 + $0x22] sm:$0xff]  ;;  %1631 = vmatmul.mubr.msk.bf16.vlgmr.msra.gmra.mxu1 %vm440_vm0, %v523_v48  ;;  %1635 = vmatpush3.bf16.msra.mxu0 %v665_v49  ;;  %v934_v12 = vld [vmem:[#allocation2 + $0x50] sm:$0xff]  ;;  %v1086_v16 = vsel %vm539_vm2, %v1558_v11, 0 }
 0x196   : > { %1701 = vmatprep.subr.msk.bf16.mxu1 %vm539_vm2, %v1543_v47  ;;  %v723_v59 = vld [vmem:[#allocation2 + $0x40] sm:$0xff]  ;;  %1642 = vmatprep.mubr.msk.bf16.mxu1 %vm440_vm0, %v724_v52  ;;  %v655_v60 = vpack.c.bf16 %v653_v56, %v652_v55  ;;  %v864_v2 = vpack.c.bf16 %v652_v55, %v651_v51  ;;  %v1004_v13 = vld [vmem:[#allocation2 + $0x51] sm:$0xff] }
 0x197   : > { %1636 = vmatprep.mubr.msk.bf16.mxu0 %vm440_vm0, %v654_v54  ;;  %1641 = vmatpush3.bf16.msra.mxu1 %v735_v53  ;;  %v725_v61 = vpack.c.bf16 %v723_v59, %v521_v45  ;;  %v793_v4 = vld [vmem:[#allocation2 + $0x41] sm:$0xff]  ;;  %v936_v14 = vpack.c.bf16 %v934_v12, %v723_v59 }
 0x198   : > { %1702 = vmatprep.subr.msk.bf16.mxu0 %vm539_vm2, %v1546_v57  ;;  %1703 = vmatprep.subr.msk.bf16.mxu1 %vm539_vm2, %v1549_v58  ;;  %v863_v6 = vld [vmem:[#allocation2 + $0x42] sm:$0xff]  ;;  %v795_v7 = vpack.c.bf16 %v793_v4, %v528_v42  ;;  %v1006_v15 = vpack.c.bf16 %v1004_v13, %v793_v4 }
 0x199   : > { %v865_v8 = vpack.c.bf16 %v863_v6, %v653_v56  ;;  %v1076_v18 = vpack.c.bf16 %v1074_v17, %v863_v6 }
 0x19c   : > { %1637 = vmatmul.mubr.msk.bf16.vlgmr.msra.gmra.mxu0 %vm440_vm0, %v655_v60 }
 0x19d   : > { %1643 = vmatmul.mubr.msk.bf16.vlgmr.msra.gmra.mxu1 %vm440_vm0, %v725_v61  ;;  %1647 = vmatpush3.bf16.msra.mxu0 %v805_v62 }
 0x19e   : > { %1653 = vmatpush3.bf16.msra.mxu1 %v875_v1  ;;  %1648 = vmatprep.mubr.msk.bf16.mxu0 %vm440_vm0, %v794_v63 }
 0x19f   : > { %1654 = vmatprep.mubr.msk.bf16.mxu1 %vm440_vm0, %v864_v2  ;;  %1704 = vmatprep.subr.msk.bf16.mxu0 %vm539_vm2, %v1552_v3 }
 0x1a0   : > { %1705 = vmatprep.subr.msk.bf16.mxu1 %vm539_vm2, %v1555_v5 }
 0x1a4   : > { %1649 = vmatmul.mubr.msk.bf16.vlgmr.msra.gmra.mxu0 %vm440_vm0, %v795_v7 }
 0x1a5   : > { %1655 = vmatmul.mubr.msk.bf16.vlgmr.msra.gmra.mxu1 %vm440_vm0, %v865_v8  ;;  %1659 = vmatpush3.bf16.msra.mxu0 %v946_v9 }
 0x1a6   : > { %1665 = vmatpush3.bf16.msra.mxu1 %v1016_v10  ;;  %1660 = vmatprep.mubr.msk.bf16.mxu0 %vm440_vm0, %v523_v48 }
 0x1a7   : > { %1666 = vmatprep.mubr.msk.bf16.mxu1 %vm440_vm0, %v530_v44  ;;  %1706 = vmatprep.subr.msk.bf16.mxu0 %vm539_vm2, %v1558_v11 }
 0x1a8   : > { %1676 = vmatprep.subr.mxu1 %v1793_v0 }
 0x1ac   : > { %1661 = vmatmul.mubr.msk.bf16.vlgmr.msra.gmra.mxu0 %vm440_vm0, %v936_v14 }
 0x1ad   : > { %1667 = vmatmul.mubr.msk.bf16.vlgmr.msra.gmra.mxu1 %vm440_vm0, %v1006_v15  ;;  %1671 = vmatpush3.bf16.msra.mxu0 %v1086_v16 }
 0x1ae   : > { %1672 = vmatprep.mubr.msk.bf16.mxu0 %vm440_vm0, %v655_v60  ;;  %1687 = vmatprep.subr.mxu0 %v1793_v0 }
 0x1af   : > { %1684 = vmatprep.mubr.msk.f32.mxu1 %vm1797_vm3, %v1793_v0 }
 0x1b4   : > { %1673 = vmatmul.mubr.msk.bf16.vlgmr.msra.gmra.mxu0 %vm440_vm0, %v1076_v18  ;;  %v1561_v18 = vld [vmem:[%s2047_s4] ss:$0 sm:$0xff] }
 0x1b5   : > { %1695 = vmatprep.mubr.msk.f32.mxu0 %vm1797_vm3, %v1793_v0 }
 0x254   : > { %v1626_v19 = vpop.f32.mrf.mxu0 }
 0x255   : > { %v1632_v20 = vpop.f32.mrf.mxu1 }
 0x256   : > { %v577_v21 = vpop.f32.mrf.mxu0  ;;  %v644_v34 = vadd.f32 %v1632_v20, %v1626_v19 }
 0x257   : > { %v635_v22 = vpop.f32.mrf.mxu1 }
 0x258   : > { %v1627_v23 = vpop.f32.mrf.mxu0  ;;  %v636_v37 = vadd.f32 %v635_v22, %v577_v21 }
 0x259   : > { %v1633_v24 = vpop.f32.mrf.mxu1 }
 0x25a   : > { %v580_v25 = vpop.f32.mrf.mxu0  ;;  %v647_v38 = vadd.f32 %v1633_v24, %v1627_v23 }
 0x25b   : > { %v638_v26 = vpop.f32.mrf.mxu1 }
 0x25c   : > { %v1638_v27 = vpop.f32.mrf.mxu0  ;;  %v639_v42 = vadd.f32 %v638_v26, %v580_v25 }
 0x25d   : > { %v1644_v28 = vpop.f32.mrf.mxu1  ;;  %v718_v39 = vadd.f32 %v1638_v27, %v644_v34 }
 0x25e   : > { %v701_v29 = vpop.f32.mrf.mxu0 }
 0x25f   : > { %v771_v30 = vpop.f32.mrf.mxu1  ;;  %v716_v43 = vadd.f32 %v701_v29, %v636_v37  ;;  %v788_v47 = vadd.f32 %v1644_v28, %v718_v39 }
 0x260   : > { %v1639_v31 = vpop.f32.mrf.mxu0 }
 0x261   : > { %v1645_v32 = vpop.f32.mrf.mxu1  ;;  %v719_v44 = vadd.f32 %v1639_v31, %v647_v38  ;;  %v786_v51 = vadd.f32 %v771_v30, %v716_v43 }
 0x262   : > { %v704_v33 = vpop.f32.mrf.mxu0 }
 0x263   : > { %v774_v35 = vpop.f32.mrf.mxu1  ;;  %v717_v48 = vadd.f32 %v704_v33, %v639_v42  ;;  %v789_v52 = vadd.f32 %v1645_v32, %v719_v44 }
 0x264   : > { %v1650_v36 = vpop.f32.mrf.mxu0 }
 0x265   : > { %v1656_v40 = vpop.f32.mrf.mxu1  ;;  %v858_v53 = vadd.f32 %v1650_v36, %v788_v47  ;;  %v787_v56 = vadd.f32 %v774_v35, %v717_v48  ;;  %v1798_v35 = vmov 1.0  }
 0x266   : > { %v841_v41 = vpop.f32.mrf.mxu0 }
 0x267   : > { %v911_v45 = vpop.f32.mrf.mxu1  ;;  %v856_v57 = vadd.f32 %v841_v41, %v786_v51  ;;  %v928_v61 = vadd.f32 %v1656_v40, %v858_v53 }
 0x268   : > { %v1651_v46 = vpop.f32.mrf.mxu0 }
 0x269   : > { %v1657_v49 = vpop.f32.mrf.mxu1  ;;  %v859_v58 = vadd.f32 %v1651_v46, %v789_v52  ;;  %v926_v2 = vadd.f32 %v911_v45, %v856_v57 }
 0x26a   : > { %v844_v50 = vpop.f32.mrf.mxu0 }
 0x26b   : > { %v914_v54 = vpop.f32.mrf.mxu1  ;;  %v857_v62 = vadd.f32 %v844_v50, %v787_v56  ;;  %v929_v3 = vadd.f32 %v1657_v49, %v859_v58 }
 0x26c   : > { %v1662_v55 = vpop.f32.mrf.mxu0 }
 0x26d   : > { %v1668_v59 = vpop.f32.mrf.mxu1  ;;  %v999_v4 = vadd.f32 %v1662_v55, %v928_v61  ;;  %v927_v6 = vadd.f32 %v914_v54, %v857_v62 }
 0x26e   : > { %v982_v60 = vpop.f32.mrf.mxu0 }
 0x26f   : > { %v1052_v63 = vpop.f32.mrf.mxu1  ;;  %v997_v7 = vadd.f32 %v982_v60, %v926_v2  ;;  %v1069_v11 = vadd.f32 %v1668_v59, %v999_v4 }
 0x270   : > { %v1663_v1 = vpop.f32.mrf.mxu0 }
 0x271   : > { %v1000_v8 = vadd.f32 %v1663_v1, %v929_v3  ;;  %v1669_v9 = vpop.f32.mrf.mxu1  ;;  %v1067_v14 = vadd.f32 %v1052_v63, %v997_v7 }
 0x272   : > { %v985_v5 = vpop.f32.mrf.mxu0 }
 0x273   : > { %v998_v12 = vadd.f32 %v985_v5, %v927_v6  ;;  %v1070_v15 = vadd.f32 %v1669_v9, %v1000_v8  ;;  %v1055_v17 = vpop.f32.mrf.mxu1 }
 0x274   : > { %v1674_v10 = vpop.f32.mrf.mxu0 }
 0x275   : > { %v1139_v16 = vadd.f32 %v1674_v10, %v1069_v11  ;;  %v1068_v20 = vadd.f32 %v1055_v17, %v998_v12 }
 0x276   : > { %v1122_v13 = vpop.f32.mrf.mxu0 }
 0x277   : > { %v1137_v21 = vadd.f32 %v1122_v13, %v1067_v14  ;;  %v1150_v24 = vadd.f32 %v1561_v18, %v1139_v16 }
 0x278   : > { %v1675_v19 = vpop.f32.mrf.mxu0 }
 0x279   : > { %v1140_v22 = vadd.f32 %v1675_v19, %v1070_v15  ;;  %v1148_v27 = vadd.f32 %v1561_v18, %v1137_v21  ;;  %v1228_v31 = vmul.f32 %v1150_v24, %v1150_v24 }
 0x27a   : > { %v1125_v23 = vpop.f32.mrf.mxu0 }
 0x27b   : > { %v1151_v25 = vadd.f32 %v1561_v18, %v1140_v22  ;;  %v1138_v26 = vadd.f32 %v1125_v23, %v1068_v20  ;;  %v1226_v34 = vmul.f32 %v1148_v27, %v1148_v27 }
 0x27d   : > { %v1229_v28 = vmul.f32 %v1151_v25, %v1151_v25  ;;  %v1582_v29 = vpack.c.bf16 %v1151_v25, %v1150_v24  ;;  %v1149_v30 = vadd.f32 %v1561_v18, %v1138_v26  ;;  %1677 = vmatpush3.msra.mxu1 %v1151_v25 }
 0x27e   : > { %1678 = vmatprep.subr.mxu1 %v1793_v0 }
 0x27f   : > { %1584 = vst [vmem:[%s1927_s17 + $0x8] sm:$0xff] %v1582_v29   ;;  %v1577_v32 = vpack.c.bf16 %v1149_v30, %v1148_v27  ;;  %1679 = vmatpush3.msra.mxu1 %v1150_v24  ;;  %1688 = vmatpush3.msra.mxu0 %v1229_v28  ;;  %v1227_v33 = vmul.f32 %v1149_v30, %v1149_v30 }
 0x280   : > { %1680 = vmatprep.subr.mxu1 %v1793_v0  ;;  %1689 = vmatprep.subr.mxu0 %v1793_v0 }
 0x281   : > { %1578 = vst [vmem:[%s1927_s17] sm:$0xff] %v1577_v32   ;;  %1681 = vmatpush3.msra.mxu1 %v1149_v30  ;;  %1690 = vmatpush3.msra.mxu0 %v1228_v31 }
 0x282   : > { %1682 = vmatprep.subr.mxu1 %v1793_v0  ;;  %1691 = vmatprep.subr.mxu0 %v1793_v0 }
 0x283   : > { %1683 = vmatpush3.msra.mxu1 %v1148_v27  ;;  %1692 = vmatpush3.msra.mxu0 %v1227_v33 }
 0x284   : > { %1693 = vmatprep.subr.mxu0 %v1793_v0  ;;  %1685 = vmatmul.mubr.msk.f32.vlgmr.msra.gmra.mxu1 %vm1152_vm4, %v1798_v35 }
 0x285   : > { %1694 = vmatpush3.msra.mxu0 %v1226_v34 }
 0x286   : > { %1696 = vmatmul.mubr.msk.f32.vlgmr.msra.gmra.mxu0 %vm1152_vm4, %v1798_v35 }
 0x344   : > { %v1222_v36 = vpop.f32.mrf.mxu1 }
 0x346   : > { %v1296_v37 = vpop.f32.mrf.mxu0  ;;  %v1686_v38 = vpop.f32.mrf.mxu1 }
 0x347   : > { %v1301_v39 = vrot.slane %v1296_v37, 7 }
 0x348   : > { %v1697_v40 = vpop.f32.mrf.mxu0 }
 0x349   : > { %v1304_v41 = vsel %vm1303_vm5, %v1222_v36, %v1301_v39 }
 0x34a   : > { %1305 = vst [vmem:[%s1935_s12] sm:$0x3] %v1304_v41 }
 0x34b PF: > { %s17_s25 = sadd.s32 1, %s1791_s25   ;;  %s2051_s21 = smov %s1783_s23 }
 0x34c   : > { %p14_p13 = scmp.ge.s32.totalorder %s17_s25, 6   ;;  %s2052_s22 = smov %s1787_s24 }
 0x34d   : > { %s2053_s23 = smov %s2056_s26  ;;  %s2054_s24 = smov %s2060_s27 }
 0x34e   :  { %16 = sbr.rel (!%p14_p13) target bundleno = 3 (0x3), region = 107 }

// kernel: _lambda_.4
= control target key start
LH: loop header
LB: loop body
LE: loop exit
PB: predicated region body
PF: predicated region fallthrough
CT: control target
= control target key end

     0   :  { %s2819_s27 = smov 0   ;;  %s2821_s28 = smov 0   ;;  %s3229_s0 = inlined_call_operand.vmem [shape: bf16[2,8,8,128], index: 0, kind: input, shape index: {}, may-alias: {0,1,2}]   ;;  %s3230_s1 = inlined_call_operand.vmem [shape: bf16[2,8,8,128], index: 1, kind: input, shape index: {}, may-alias: {0,1,2}]   ;;  %s3231_s2 = inlined_call_operand.vmem [shape: bf16[2,8,8,128], index: 2, kind: input, shape index: {}, may-alias: {0,1,2}]   ;;  %s3232_s3 = inlined_call_operand.vmem [shape: f32[1,128], index: 3, kind: input, shape index: {}]   ;;  %s3233_s4 = inlined_call_operand.vmem [shape: f32[1,128], index: 4, kind: input, shape index: {}]   ;;  %s3234_s5 = inlined_call_operand.vmem [shape: bf16[9,128,128], index: 5, kind: input, shape index: {}]   ;;  %s3235_s6 = inlined_call_operand.vmem [shape: f32[1,128], index: 6, kind: input, shape index: {}]   ;;  %s3236_s7 = inlined_call_operand.vmem [shape: bf16[2,8,8,128], index: 7, kind: output, shape index: {0}]   ;;  %s3237_s8 = inlined_call_operand.vmem [shape: f32[2,2,2,128], index: 8, kind: output, shape index: {1}]  }
   0x1   :  { %3238 = sst [smem:[#allocation3_spill]] %s3229_s0  ;;  %s2823_s29 = smov 0  }
   0x2   :  { %s2825_s30 = smov 0   ;;  %s2827_s9 = smov 0  }
   0x3 LB: > { %s28_s10 = sadd.s32 1, %s2761_s29  ;;  %s31_s11 = sadd.s32 1, %s2765_s30  ;;  %s2769_s9 = sphi %s2827_s9, %s19_s9   ;;  %s2765_s30 = sphi %s2825_s30, %s3244_s30   ;;  %s2761_s29 = sphi %s2823_s29, %s3243_s29   ;;  %s2757_s28 = sphi %s2821_s28, %s3242_s28   ;;  %s2753_s27 = sphi %s2819_s27, %s3241_s27  }
   0x4   : > { %p29_p0 = scmp.ge.s32.totalorder %s28_s10, 2  ;;  %p2049_p1 = scmp.ge.s32.totalorder %s2769_s9, 1 }
   0x5   : > { %p350_p2 = scmp.lt.s32.totalorder %s2769_s9, 5 }
   0x6   : > { %s3246_s10 = smov (%p29_p0, %s28_s10), 0  ;;  %s3248_s11 = smov (!%p29_p0, %s31_s11), %s2765_s30 }
   0x7   : > { %p351_p3 = pnand %p2049_p1, %p350_p2  ;;  %p33_p4 = scmp.ge.s32.totalorder %s3248_s11, 2 }
   0x8   : > { %s2854_s12 = sshll.u32 (!%p351_p3), %s2753_s27, 2  ;;  %p425_p5 = scmp.lt.s32.totalorder (!%p351_p3), %s2757_s28, 1 }
   0x9   : > { %s3250_s11 = smov (%p33_p4, %s3248_s11), 0  ;;  %354 = sbr.rel (%p351_p3) target bundleno = 633 (0x279), region = 48 }
   0xa   : > { %p427_p6 = scmp.lt.s32.totalorder (!%p351_p3), %s2854_s12, 7  ;;  %s2054_s13 = sadd.s32 (!%p351_p3), 4294967295, %s2854_s12 }
   0xb   : > { %p436_p7 = scmp.gt.s32.totalorder (!%p351_p3), %s2054_s13, 0  ;;  %p2055_p8 = scmp.lt.s32.totalorder (!%p351_p3), %s2054_s13, 7 }
   0xc   : > { %s2293_s18 = sadd.s32 (!%p351_p3), 4, %s2854_s12  ;;  %s3239_s0 = sld [smem:[#allocation3_spill]] (!%p351_p3) }
   0xd   : > { %p2882_p9 = scmp.lt.s32.totalorder (!%p351_p3), %s2293_s18, 7  ;;  %p478_p10 = scmp.lt.s32.totalorder (!%p351_p3), %s2753_s27, 1 }
   0xe   : > { %v2771_v0 = vmov 0.0   ;;  %s3252_s28 = smov (!%p425_p5, %s2757_s28), 1  ;;  %v2073_v2 = vld [vmem:[%s3232_s3] ss:$0 sm:$0xff]  ;;  %p2075_p11 = scmp.le.s32.totalorder %s2753_s27, 0 }
   0xf   : > { %487 = vst [vmem:[#allocation2 + $0x10] sm:$0xff] %v2771_v0  ;;  %485 = vst [vmem:[#allocation2] sm:$0xff] %v2771_v0  ;;  %s428_s14 = scalar_select %p427_p6, %s2854_s12, 7  ;;  %v2074_v8 = vld [vmem:[%s3233_s4] ss:$0 sm:$0xff] }
  0x10   : > { %486 = vst [vmem:[#allocation2 + $0x8] sm:$0x3] %v2771_v0  ;;  %488 = vst [vmem:[#allocation2 + $0x18] sm:$0x3] %v2771_v0  ;;  %s2051_s15 = sshll.u32 %s3252_s28, 3  ;;  %s3254_s18 = smov (!%p2882_p9, %s2293_s18), 7 }
  0x11   : > { %489 = vst [vmem:[#allocation2 + $0x20] sm:$0xff] %v2771_v0  ;;  %490 = vst [vmem:[#allocation2 + $0x28] sm:$0x3] %v2771_v0  ;;  %s430_s16 = sadd.s32 %s2051_s15, %s428_s14  ;;  %s3258_s18 = smov (!%p2882_p9, %s3254_s18), 7 }
  0x12   : > { %491 = vst [vmem:[#allocation2 + $0x30] sm:$0xff] %v2771_v0  ;;  %492 = vst [vmem:[#allocation2 + $0x38] sm:$0x3] %v2771_v0  ;;  %s2052_s17 = sshll.u32 %s430_s16, 2 }
  0x13   : > { %493 = vst [vmem:[#allocation2 + $0x40] sm:$0xff] %v2771_v0  ;;  %494 = vst [vmem:[#allocation2 + $0x48] sm:$0x3] %v2771_v0  ;;  %s432_s21 = scalar_lea.vmem %s3239_s0, %s2052_s17  ;;  %s2900_s20 = scalar_lea.vmem %s3236_s7, %s2052_s17 }
  0x14   : > { %495 = vst [vmem:[#allocation2 + $0x50] sm:$0xff] %v2771_v0  ;;  %496 = vst [vmem:[#allocation2 + $0x58] sm:$0x3] %v2771_v0  ;;  %s437_s23 = scalar_select %p436_p7, %s2054_s13, 0  ;;  %v2295_v1 = vld [vmem:[%s432_s21] sm:$0xff]   ;;  %v2312_v3 = vld [vmem:[%s432_s21 + $0x8] sm:$0xff]  }
  0x15   : > { %v2296_v4 = vunpack.c.l.bf16 %v2295_v1  ;;  %v2297_v5 = vunpack.c.h.bf16 %v2295_v1  ;;  %v2300_v6 = vunpack.c.l.bf16 %v2312_v3  ;;  %v2301_v7 = vunpack.c.h.bf16 %v2312_v3  ;;  %s459_s21 = sadd.s32 %s2051_s15, %s3258_s18  ;;  %s2071_s17 = sshll.u32 %s3252_s28, 1 }
  0x16   : > { %s3256_s23 = smov (!%p2055_p8, %s437_s23), 7  ;;  %s2067_s26 = sshll.u32 %s459_s21, 2 }
  0x17   : > { %v512_v9 = vmul.f32 %v2296_v4, %v2073_v2  ;;  %v513_v10 = vmul.f32 %v2297_v5, %v2073_v2  ;;  %v514_v11 = vmul.f32 %v2300_v6, %v2073_v2  ;;  %v515_v12 = vmul.f32 %v2301_v7, %v2073_v2  ;;  %s443_s14 = sadd.s32 %s3256_s23, %s2051_s15  ;;  %s461_s0 = scalar_lea.vmem %s3231_s2, %s2067_s26 }
  0x18   : > { %s2061_s13 = sshll.u32 %s443_s14, 2 }
  0x19   : > { %v523_v13 = vadd.f32 %v2074_v8, %v512_v9  ;;  %v524_v14 = vadd.f32 %v2074_v8, %v513_v10  ;;  %v525_v15 = vadd.f32 %v2074_v8, %v514_v11  ;;  %v526_v16 = vadd.f32 %v2074_v8, %v515_v12  ;;  %s445_s25 = scalar_lea.vmem %s3230_s1, %s2061_s13 }
  0x1a   : > { %s479_s15 = scalar_select %p478_p10, %s2753_s27, 1 }
  0x1b   : > { %v527_v17 = vmax.f32 %v523_v13, 0.0  ;;  %v528_v18 = vmax.f32 %v524_v14, 0.0  ;;  %v529_v19 = vmax.f32 %v525_v15, 0.0  ;;  %v530_v20 = vmax.f32 %v526_v16, 0.0  ;;  %539 = sbr.rel (%p2075_p11) target bundleno = 42 (0x2a), region = 52 }
  0x1c   : > { %s481_s18 = sadd.s32 %s2071_s17, %s479_s15 }
  0x1d   : > { %532 = vst [vmem:[#allocation2 + $0x11] sm:$0xff] %v527_v17  ;;  %533 = vst [vmem:[#allocation2 + $0x21] sm:$0xff] %v528_v18  ;;  %s2072_s14 = sshll.u32 %s481_s18, 1 }
  0x1e   : > { %534 = vst [vmem:[#allocation2 + $0x31] sm:$0xff] %v529_v19  ;;  %535 = vst [vmem:[#allocation2 + $0x41] sm:$0xff] %v530_v20  ;;  %s2914_s13 = scalar_lea.vmem %s3237_s8, %s2072_s14 }
  0x20   : > { %v540_v21 = vld [vmem:[%s445_s25] sm:$0xf] }
  0x21   : > { %v2076_v22 = vld [vmem:[%s3232_s3] ss:$0 sm:$0xff]  ;;  %v541_v23 = vunpack.c.l.bf16 %v540_v21 }
  0x22   : > { %v2077_v24 = vld [vmem:[%s3233_s4] ss:$0 sm:$0xff] }
  0x23   : > { %v549_v25 = vmul.f32 %v2076_v22, %v541_v23 }
  0x25   : > { %v557_v26 = vadd.f32 %v2077_v24, %v549_v25 }
  0x27   : > { %v558_v27 = vmax.f32 %v557_v26, 0.0 }
  0x29   : > { %559 = vst [vmem:[#allocation2 + $0x1] sm:$0xff] %v558_v27 }
  0x2a PF: > { %p2078_p12 = scmp.ge.s32.totalorder %s2753_s27, 1 }
  0x2c   : > { %563 = sbr.rel (%p2078_p12) target bundleno = 59 (0x3b), region = 56 }
  0x31   : > { %v564_v28 = vld [vmem:[%s461_s0] sm:$0xf] }
  0x32   : > { %v2079_v29 = vld [vmem:[%s3232_s3] ss:$0 sm:$0xff]  ;;  %v565_v30 = vunpack.c.l.bf16 %v564_v28 }
  0x33   : > { %v2080_v31 = vld [vmem:[%s3233_s4] ss:$0 sm:$0xff] }
  0x34   : > { %v573_v32 = vmul.f32 %v2079_v29, %v565_v30 }
  0x36   : > { %v581_v33 = vadd.f32 %v2080_v31, %v573_v32 }
  0x38   : > { %v582_v34 = vmax.f32 %v581_v33, 0.0 }
  0x3a   : > { %584 = vst [vmem:[#allocation2 + $0x51] sm:$0xff] %v582_v34 }
  0x3b PF: > { %v2659_v35 = vld [vmem:[%s3234_s5 + $0x78] sm:$0xff]   ;;  %v2661_v37 = vld [vmem:[%s3234_s5 + $0x70] sm:$0xff]   ;;  %v2663_v39 = vld [vmem:[%s3234_s5 + $0x68] sm:$0xff]   ;;  %vm2772_vm0 = vmmov 0   ;;  %vm1704_vm1 = vcmask 261120   ;;  %vm1855_vm2 = vcmask 1040384  }
  0x3c   : > { %v2660_v36 = vld [vmem:[%s3234_s5 + $0x38] sm:$0xff]   ;;  %2414 = vmatprep.subr.bf16.mxu0 %v2659_v35  ;;  %v2662_v38 = vld [vmem:[%s3234_s5 + $0x30] sm:$0xff]   ;;  %v2664_v40 = vld [vmem:[%s3234_s5 + $0x28] sm:$0xff]  }
  0x3d   : > { %2434 = vmatprep.subr.bf16.mxu1 %v2660_v36  ;;  %2415 = vmatpush3.bf16.msra.mxu0 %v2659_v35  ;;  %v2665_v41 = vld [vmem:[%s3234_s5 + $0x60] sm:$0xff]   ;;  %v2667_v43 = vld [vmem:[%s3234_s5 + $0x58] sm:$0xff]   ;;  %v2669_v45 = vld [vmem:[%s3234_s5 + $0x50] sm:$0xff]  }
  0x3e   : > { %2435 = vmatpush3.bf16.msra.mxu1 %v2660_v36  ;;  %2416 = vmatprep.subr.bf16.mxu0 %v2661_v37  ;;  %v2666_v42 = vld [vmem:[%s3234_s5 + $0x20] sm:$0xff]   ;;  %v2668_v44 = vld [vmem:[%s3234_s5 + $0x18] sm:$0xff]   ;;  %v2670_v49 = vld [vmem:[%s3234_s5 + $0x10] sm:$0xff]  }
  0x3f   : > { %2436 = vmatprep.subr.bf16.mxu1 %v2662_v38  ;;  %v607_v46 = vld [vmem:[#allocation2 + $0x1] sm:$0xff]  ;;  %v2963_v47 = vld [vmem:[#allocation2 + $0x11] sm:$0xff] }
  0x40   : > { %v585_v48 = vld [vmem:[#allocation2] sm:$0xff]  ;;  %v611_v50 = vpack.c.bf16 %v2963_v47, %v607_v46  ;;  %v586_v51 = vld [vmem:[#allocation2 + $0x10] sm:$0xff]  ;;  %v2671_v53 = vld [vmem:[%s3234_s5 + $0x48] sm:$0xff]  }
  0x41   : > { %2417 = vmatpush3.bf16.msra.mxu0 %v2661_v37  ;;  %v589_v52 = vpack.c.bf16 %v586_v51, %v585_v48  ;;  %v2672_v54 = vld [vmem:[%s3234_s5 + $0x8] sm:$0xff]   ;;  %v2673_v55 = vld [vmem:[%s3234_s5 + $0x40] sm:$0xff]   ;;  %v2983_v58 = vld [vmem:[#allocation2 + $0x31] sm:$0xff] }
  0x42   : > { %2437 = vmatpush3.bf16.msra.mxu1 %v2662_v38  ;;  %2418 = vmatprep.subr.bf16.mxu0 %v2663_v39  ;;  %v2674_v56 = vld [vmem:[%s3234_s5] sm:$0xff]   ;;  %v2985_v60 = vld [vmem:[#allocation2 + $0x30] sm:$0xff]  ;;  %v2675_v61 = vld [vmem:[%s3234_s5 + $0xb8] sm:$0xff]  }
  0x43   : > { %2438 = vmatprep.subr.bf16.mxu1 %v2664_v40  ;;  %2430 = vmatprep.mubr.bf16.mxu0 %v611_v50  ;;  %v2981_v57 = vld [vmem:[#allocation2 + $0x21] sm:$0xff]  ;;  %v2676_v62 = vld [vmem:[%s3234_s5 + $0xf8] sm:$0xff]   ;;  %v2677_v2 = vld [vmem:[%s3234_s5 + $0xb0] sm:$0xff]  }
  0x44   : > { %2450 = vmatprep.mubr.bf16.mxu1 %v589_v52  ;;  %v587_v59 = vld [vmem:[#allocation2 + $0x20] sm:$0xff]  ;;  %v2995_v63 = vpack.c.bf16 %v2983_v58, %v2981_v57  ;;  %v2678_v3 = vld [vmem:[%s3234_s5 + $0xf0] sm:$0xff]   ;;  %v2679_v7 = vld [vmem:[%s3234_s5 + $0xa8] sm:$0xff]   ;;  %v1076_v29 = vpack.c.bf16 %v2981_v57, %v2963_v47 }
  0x45   : > { %2419 = vmatpush3.bf16.msra.mxu0 %v2663_v39  ;;  %v2998_v1 = vpack.c.bf16 %v2985_v60, %v587_v59  ;;  %v952_v4 = vpack.c.bf16 %v587_v59, %v586_v51  ;;  %v824_v5 = vld [vmem:[#allocation2 + $0x2] sm:$0xff]  ;;  %v3008_v6 = vld [vmem:[#allocation2 + $0x12] sm:$0xff] }
  0x46   : > { %2439 = vmatpush3.bf16.msra.mxu1 %v2664_v40  ;;  %2420 = vmatprep.subr.bf16.mxu0 %v2665_v41  ;;  %v828_v8 = vpack.c.bf16 %v3008_v6, %v824_v5  ;;  %v2680_v9 = vld [vmem:[%s3234_s5 + $0xe8] sm:$0xff]   ;;  %v2681_v10 = vld [vmem:[%s3234_s5 + $0xa0] sm:$0xff]   ;;  %v2683_v12 = vld [vmem:[%s3234_s5 + $0x98] sm:$0xff]  }
  0x47   : > { %2440 = vmatprep.subr.bf16.mxu1 %v2666_v42  ;;  %v2682_v11 = vld [vmem:[%s3234_s5 + $0xe0] sm:$0xff]   ;;  %v2684_v13 = vld [vmem:[%s3234_s5 + $0xd8] sm:$0xff]   ;;  %v2685_v14 = vld [vmem:[%s3234_s5 + $0x90] sm:$0xff]  }
  0x48   : > { %v2686_v15 = vld [vmem:[%s3234_s5 + $0xd0] sm:$0xff]   ;;  %v2687_v16 = vld [vmem:[%s3234_s5 + $0x88] sm:$0xff]   ;;  %v2689_v18 = vld [vmem:[%s3234_s5 + $0x80] sm:$0xff]  }
  0x49   : > { %2421 = vmatpush3.bf16.msra.mxu0 %v2665_v41  ;;  %v2688_v17 = vld [vmem:[%s3234_s5 + $0xc8] sm:$0xff]   ;;  %v2690_v19 = vld [vmem:[%s3234_s5 + $0xc0] sm:$0xff]   ;;  %v3047_v21 = vld [vmem:[#allocation2 + $0x32] sm:$0xff] }
  0x4a   : > { %2441 = vmatpush3.bf16.msra.mxu1 %v2666_v42  ;;  %2422 = vmatprep.subr.bf16.mxu0 %v2667_v43  ;;  %v826_v20 = vld [vmem:[#allocation2 + $0x22] sm:$0xff]  ;;  %v2691_v22 = vld [vmem:[%s3234_s5 + $0x138] sm:$0xff]   ;;  %v2693_v27 = vld [vmem:[%s3234_s5 + $0x130] sm:$0xff]  }
  0x4b   : > { %2442 = vmatprep.subr.bf16.mxu1 %v2668_v44  ;;  %v3052_v23 = vld [vmem:[#allocation2 + $0x40] sm:$0xff]  ;;  %v2692_v24 = vld [vmem:[%s3234_s5 + $0x178] sm:$0xff]   ;;  %v3058_v25 = vpack.c.bf16 %v3047_v21, %v826_v20  ;;  %v2694_v28 = vld [vmem:[%s3234_s5 + $0x170] sm:$0xff]   ;;  %v1200_v30 = vpack.c.bf16 %v826_v20, %v3008_v6 }
  0x4c   : > { %v953_v26 = vpack.c.bf16 %v3052_v23, %v2985_v60  ;;  %v2695_v31 = vld [vmem:[%s3234_s5 + $0x128] sm:$0xff]   ;;  %v2697_v33 = vld [vmem:[%s3234_s5 + $0x120] sm:$0xff]   ;;  %v2699_v35 = vld [vmem:[%s3234_s5 + $0x118] sm:$0xff]  }
  0x4d   : > { %2423 = vmatpush3.bf16.msra.mxu0 %v2667_v43  ;;  %v2696_v32 = vld [vmem:[%s3234_s5 + $0x168] sm:$0xff]   ;;  %v2698_v34 = vld [vmem:[%s3234_s5 + $0x160] sm:$0xff]   ;;  %v2700_v36 = vld [vmem:[%s3234_s5 + $0x158] sm:$0xff]  }
  0x4e   : > { %2443 = vmatpush3.bf16.msra.mxu1 %v2668_v44  ;;  %2424 = vmatprep.subr.bf16.mxu0 %v2669_v45  ;;  %v2701_v37 = vld [vmem:[%s3234_s5 + $0x110] sm:$0xff]   ;;  %v2703_v39 = vld [vmem:[%s3234_s5 + $0x108] sm:$0xff]   ;;  %v2705_v41 = vld [vmem:[%s3234_s5 + $0x100] sm:$0xff]  }
  0x4f   : > { %2444 = vmatprep.subr.bf16.mxu1 %v2670_v49  ;;  %v2702_v38 = vld [vmem:[%s3234_s5 + $0x150] sm:$0xff]   ;;  %v2704_v40 = vld [vmem:[%s3234_s5 + $0x148] sm:$0xff]   ;;  %v2706_v42 = vld [vmem:[%s3234_s5 + $0x140] sm:$0xff]  }
  0x50   : > { %v3108_v43 = vld [vmem:[#allocation2 + $0x41] sm:$0xff]  ;;  %v2707_v44 = vld [vmem:[%s3234_s5 + $0x1b8] sm:$0xff]   ;;  %v2710_v50 = vld [vmem:[%s3234_s5 + $0x1f0] sm:$0xff]  }
  0x51   : > { %2425 = vmatpush3.bf16.msra.mxu0 %v2669_v45  ;;  %v3113_v45 = vld [vmem:[#allocation2 + $0x42] sm:$0xff]  ;;  %v2708_v46 = vld [vmem:[%s3234_s5 + $0x1f8] sm:$0xff]   ;;  %v1077_v47 = vpack.c.bf16 %v3108_v43, %v2983_v58  ;;  %v2717_v57 = vld [vmem:[%s3234_s5 + $0x190] sm:$0xff]  }
  0x52   : > { %2445 = vmatpush3.bf16.msra.mxu1 %v2670_v49  ;;  %2426 = vmatprep.subr.bf16.mxu0 %v2671_v53  ;;  %v1201_v48 = vpack.c.bf16 %v3113_v45, %v3047_v21  ;;  %v2709_v49 = vld [vmem:[%s3234_s5 + $0x1b0] sm:$0xff]   ;;  %v2711_v51 = vld [vmem:[%s3234_s5 + $0x1a8] sm:$0xff]  }
  0x53   : > { %2446 = vmatprep.subr.bf16.mxu1 %v2672_v54  ;;  %v2712_v52 = vld [vmem:[%s3234_s5 + $0x1e8] sm:$0xff]   ;;  %v2718_v58 = vld [vmem:[%s3234_s5 + $0x1d0] sm:$0xff]  }
  0x54   : > { %v2719_v59 = vld [vmem:[%s3234_s5 + $0x188] sm:$0xff]   ;;  %v2724_v5 = vld [vmem:[%s3234_s5 + $0x230] sm:$0xff]  }
  0x55   : > { %2427 = vmatpush3.bf16.msra.mxu0 %v2671_v53  ;;  %v2713_v53 = vld [vmem:[%s3234_s5 + $0x1a0] sm:$0xff]   ;;  %v2720_v60 = vld [vmem:[%s3234_s5 + $0x1c8] sm:$0xff]  }
  0x56   : > { %2447 = vmatpush3.bf16.msra.mxu1 %v2672_v54  ;;  %2428 = vmatprep.subr.bf16.mxu0 %v2673_v55  ;;  %v2714_v54 = vld [vmem:[%s3234_s5 + $0x1e0] sm:$0xff]   ;;  %v2725_v6 = vld [vmem:[%s3234_s5 + $0x228] sm:$0xff]  }
  0x57   : > { %2448 = vmatprep.subr.bf16.mxu1 %v2674_v56 }
  0x59   : > { %2429 = vmatpush3.bf16.msra.mxu0 %v2673_v55  ;;  %v2715_v55 = vld [vmem:[%s3234_s5 + $0x198] sm:$0xff]  }
  0x5a   : > { %2449 = vmatpush3.bf16.msra.mxu1 %v2674_v56  ;;  %2454 = vmatprep.subr.bf16.mxu0 %v2675_v61  ;;  %v2716_v56 = vld [vmem:[%s3234_s5 + $0x1d8] sm:$0xff]  }
  0x5b   : > { %2474 = vmatprep.subr.bf16.mxu1 %v2676_v62 }
  0x5c   : > { %2431 = vmatmul.mubr.bf16.vlgmr.msra.gmra.mxu0 %v2995_v63 }
  0x5d   : > { %2451 = vmatmul.mubr.bf16.vlgmr.msra.gmra.mxu1 %v2998_v1  ;;  %2455 = vmatpush3.bf16.msra.mxu0 %v2675_v61  ;;  %v2721_v61 = vld [vmem:[%s3234_s5 + $0x180] sm:$0xff]  }
  0x5e   : > { %2475 = vmatpush3.bf16.msra.mxu1 %v2676_v62  ;;  %2456 = vmatprep.subr.bf16.mxu0 %v2677_v2  ;;  %v2722_v62 = vld [vmem:[%s3234_s5 + $0x1c0] sm:$0xff]  }
  0x5f   : > { %2476 = vmatprep.subr.bf16.mxu1 %v2678_v3  ;;  %2490 = vmatprep.mubr.bf16.mxu1 %v952_v4 }
  0x60   : > { %2470 = vmatprep.mubr.bf16.mxu0 %v828_v8  ;;  %v2727_v8 = vld [vmem:[%s3234_s5 + $0x218] sm:$0xff]  }
  0x61   : > { %2457 = vmatpush3.bf16.msra.mxu0 %v2677_v2  ;;  %v1448_v2 = vld [vmem:[#allocation2 + $0x51] sm:$0xff] }
  0x62   : > { %2477 = vmatpush3.bf16.msra.mxu1 %v2678_v3  ;;  %2458 = vmatprep.subr.bf16.mxu0 %v2679_v7  ;;  %v1450_v4 = vpack.c.bf16 %v1448_v2, %v3108_v43 }
  0x63   : > { %2478 = vmatprep.subr.bf16.mxu1 %v2680_v9 }
  0x65   : > { %2459 = vmatpush3.bf16.msra.mxu0 %v2679_v7  ;;  %v2726_v7 = vld [vmem:[%s3234_s5 + $0x220] sm:$0xff]  }
  0x66   : > { %2479 = vmatpush3.bf16.msra.mxu1 %v2680_v9  ;;  %2460 = vmatprep.subr.bf16.mxu0 %v2681_v10  ;;  %v2728_v9 = vld [vmem:[%s3234_s5 + $0x210] sm:$0xff]  }
  0x67   : > { %2480 = vmatprep.subr.bf16.mxu1 %v2682_v11 }
  0x69   : > { %2461 = vmatpush3.bf16.msra.mxu0 %v2681_v10  ;;  %v2729_v10 = vld [vmem:[%s3234_s5 + $0x208] sm:$0xff]  }
  0x6a   : > { %2481 = vmatpush3.bf16.msra.mxu1 %v2682_v11  ;;  %2462 = vmatprep.subr.bf16.mxu0 %v2683_v12  ;;  %v2730_v11 = vld [vmem:[%s3234_s5 + $0x200] sm:$0xff]  }
  0x6b   : > { %2482 = vmatprep.subr.bf16.mxu1 %v2684_v13 }
  0x6d   : > { %2463 = vmatpush3.bf16.msra.mxu0 %v2683_v12  ;;  %v1572_v12 = vld [vmem:[#allocation2 + $0x52] sm:$0xff] }
  0x6e   : > { %2483 = vmatpush3.bf16.msra.mxu1 %v2684_v13  ;;  %2464 = vmatprep.subr.bf16.mxu0 %v2685_v14  ;;  %v1574_v13 = vpack.c.bf16 %v1572_v12, %v3113_v45 }
  0x6f   : > { %2484 = vmatprep.subr.bf16.mxu1 %v2686_v15 }
  0x71   : > { %2465 = vmatpush3.bf16.msra.mxu0 %v2685_v14 }
  0x72   : > { %2485 = vmatpush3.bf16.msra.mxu1 %v2686_v15  ;;  %2466 = vmatprep.subr.bf16.mxu0 %v2687_v16 }
  0x73   : > { %2486 = vmatprep.subr.bf16.mxu1 %v2688_v17 }
  0x75   : > { %2467 = vmatpush3.bf16.msra.mxu0 %v2687_v16 }
  0x76   : > { %2487 = vmatpush3.bf16.msra.mxu1 %v2688_v17  ;;  %2468 = vmatprep.subr.bf16.mxu0 %v2689_v18 }
  0x77   : > { %2488 = vmatprep.subr.bf16.mxu1 %v2690_v19 }
  0x79   : > { %2469 = vmatpush3.bf16.msra.mxu0 %v2689_v18 }
  0x7a   : > { %2489 = vmatpush3.bf16.msra.mxu1 %v2690_v19  ;;  %2494 = vmatprep.subr.bf16.mxu0 %v2691_v22 }
  0x7b   : > { %2514 = vmatprep.subr.bf16.mxu1 %v2692_v24 }
  0x7c   : > { %2471 = vmatmul.mubr.bf16.vlgmr.msra.gmra.mxu0 %v3058_v25 }
  0x7d   : > { %2495 = vmatpush3.bf16.msra.mxu0 %v2691_v22  ;;  %2491 = vmatmul.mubr.bf16.vlgmr.msra.gmra.mxu1 %v953_v26 }
  0x7e   : > { %2515 = vmatpush3.bf16.msra.mxu1 %v2692_v24  ;;  %2496 = vmatprep.subr.bf16.mxu0 %v2693_v27 }
  0x7f   : > { %2516 = vmatprep.subr.bf16.mxu1 %v2694_v28  ;;  %2510 = vmatprep.mubr.bf16.mxu0 %v1076_v29 }
  0x80   : > { %2530 = vmatprep.mubr.bf16.mxu1 %v1200_v30 }
  0x81   : > { %2497 = vmatpush3.bf16.msra.mxu0 %v2693_v27 }
  0x82   : > { %2517 = vmatpush3.bf16.msra.mxu1 %v2694_v28  ;;  %2498 = vmatprep.subr.bf16.mxu0 %v2695_v31 }
  0x83   : > { %2518 = vmatprep.subr.bf16.mxu1 %v2696_v32 }
  0x85   : > { %2499 = vmatpush3.bf16.msra.mxu0 %v2695_v31 }
  0x86   : > { %2519 = vmatpush3.bf16.msra.mxu1 %v2696_v32  ;;  %2500 = vmatprep.subr.bf16.mxu0 %v2697_v33 }
  0x87   : > { %2520 = vmatprep.subr.bf16.mxu1 %v2698_v34 }
  0x89   : > { %2501 = vmatpush3.bf16.msra.mxu0 %v2697_v33 }
  0x8a   : > { %2521 = vmatpush3.bf16.msra.mxu1 %v2698_v34  ;;  %2502 = vmatprep.subr.bf16.mxu0 %v2699_v35 }
  0x8b   : > { %2522 = vmatprep.subr.bf16.mxu1 %v2700_v36 }
  0x8d   : > { %2503 = vmatpush3.bf16.msra.mxu0 %v2699_v35 }
  0x8e   : > { %2523 = vmatpush3.bf16.msra.mxu1 %v2700_v36  ;;  %2504 = vmatprep.subr.bf16.mxu0 %v2701_v37 }
  0x8f   : > { %2524 = vmatprep.subr.bf16.mxu1 %v2702_v38 }
  0x91   : > { %2505 = vmatpush3.bf16.msra.mxu0 %v2701_v37 }
  0x92   : > { %2525 = vmatpush3.bf16.msra.mxu1 %v2702_v38  ;;  %2506 = vmatprep.subr.bf16.mxu0 %v2703_v39 }
  0x93   : > { %2526 = vmatprep.subr.bf16.mxu1 %v2704_v40 }
  0x95   : > { %2507 = vmatpush3.bf16.msra.mxu0 %v2703_v39 }
  0x96   : > { %2527 = vmatpush3.bf16.msra.mxu1 %v2704_v40  ;;  %2508 = vmatprep.subr.bf16.mxu0 %v2705_v41 }
  0x97   : > { %2528 = vmatprep.subr.bf16.mxu1 %v2706_v42 }
  0x99   : > { %2509 = vmatpush3.bf16.msra.mxu0 %v2705_v41 }
  0x9a   : > { %2529 = vmatpush3.bf16.msra.mxu1 %v2706_v42  ;;  %2534 = vmatprep.subr.bf16.mxu0 %v2707_v44 }
  0x9b   : > { %2554 = vmatprep.subr.bf16.mxu1 %v2708_v46 }
  0x9c   : > { %2511 = vmatmul.mubr.bf16.vlgmr.msra.gmra.mxu0 %v1077_v47 }
  0x9d   : > { %2535 = vmatpush3.bf16.msra.mxu0 %v2707_v44  ;;  %2531 = vmatmul.mubr.bf16.vlgmr.msra.gmra.mxu1 %v1201_v48 }
  0x9e   : > { %2555 = vmatpush3.bf16.msra.mxu1 %v2708_v46  ;;  %2536 = vmatprep.subr.bf16.mxu0 %v2709_v49 }
  0x9f   : > { %2556 = vmatprep.subr.bf16.mxu1 %v2710_v50  ;;  %2550 = vmatprep.mubr.bf16.mxu0 %v2998_v1  ;;  %v2723_v1 = vld [vmem:[%s3234_s5 + $0x238] sm:$0xff]  }
  0xa0   : > { %2570 = vmatprep.mubr.bf16.mxu1 %v2995_v63  ;;  %v1324_v63 = vld [vmem:[#allocation2 + $0x50] sm:$0xff] }
  0xa1   : > { %2537 = vmatpush3.bf16.msra.mxu0 %v2709_v49  ;;  %v1326_v3 = vpack.c.bf16 %v1324_v63, %v3052_v23 }
  0xa2   : > { %2557 = vmatpush3.bf16.msra.mxu1 %v2710_v50  ;;  %2538 = vmatprep.subr.bf16.mxu0 %v2711_v51 }
  0xa3   : > { %2558 = vmatprep.subr.bf16.mxu1 %v2712_v52 }
  0xa5   : > { %2539 = vmatpush3.bf16.msra.mxu0 %v2711_v51 }
  0xa6   : > { %2559 = vmatpush3.bf16.msra.mxu1 %v2712_v52  ;;  %2540 = vmatprep.subr.bf16.mxu0 %v2713_v53 }
  0xa7   : > { %2560 = vmatprep.subr.bf16.mxu1 %v2714_v54 }
  0xa9   : > { %2541 = vmatpush3.bf16.msra.mxu0 %v2713_v53 }
  0xaa   : > { %2561 = vmatpush3.bf16.msra.mxu1 %v2714_v54  ;;  %2542 = vmatprep.subr.bf16.mxu0 %v2715_v55 }
  0xab   : > { %2562 = vmatprep.subr.bf16.mxu1 %v2716_v56 }
  0xad   : > { %2543 = vmatpush3.bf16.msra.mxu0 %v2715_v55 }
  0xae   : > { %2563 = vmatpush3.bf16.msra.mxu1 %v2716_v56  ;;  %2544 = vmatprep.subr.bf16.mxu0 %v2717_v57 }
  0xaf   : > { %2564 = vmatprep.subr.bf16.mxu1 %v2718_v58 }
  0xb1   : > { %2545 = vmatpush3.bf16.msra.mxu0 %v2717_v57 }
  0xb2   : > { %2565 = vmatpush3.bf16.msra.mxu1 %v2718_v58  ;;  %2546 = vmatprep.subr.bf16.mxu0 %v2719_v59 }
  0xb3   : > { %2566 = vmatprep.subr.bf16.mxu1 %v2720_v60 }
  0xb5   : > { %2547 = vmatpush3.bf16.msra.mxu0 %v2719_v59 }
  0xb6   : > { %2567 = vmatpush3.bf16.msra.mxu1 %v2720_v60  ;;  %2548 = vmatprep.subr.bf16.mxu0 %v2721_v61 }
  0xb7   : > { %2568 = vmatprep.subr.bf16.mxu1 %v2722_v62 }
  0xb9   : > { %2549 = vmatpush3.bf16.msra.mxu0 %v2721_v61 }
  0xba   : > { %2569 = vmatpush3.bf16.msra.mxu1 %v2722_v62  ;;  %2574 = vmatprep.subr.bf16.mxu0 %v2723_v1 }
  0xbb   : > { %2594 = vmatprep.subr.mxu1 %v2771_v0 }
  0xbc   : > { %2551 = vmatmul.mubr.bf16.vlgmr.msra.gmra.mxu0 %v1326_v3 }
  0xbd   : > { %2575 = vmatpush3.bf16.msra.mxu0 %v2723_v1  ;;  %2571 = vmatmul.mubr.bf16.vlgmr.msra.gmra.mxu1 %v1450_v4 }
  0xbe   : > { %2576 = vmatprep.subr.bf16.mxu0 %v2724_v5  ;;  %2590 = vmatprep.mubr.bf16.mxu0 %v3058_v25 }
  0xbf   : > { %2602 = vmatprep.mubr.msk.f32.mxu1 %vm2772_vm0, %v2771_v0 }
  0xc1   : > { %2577 = vmatpush3.bf16.msra.mxu0 %v2724_v5 }
  0xc2   : > { %2578 = vmatprep.subr.bf16.mxu0 %v2725_v6 }
  0xc5   : > { %2579 = vmatpush3.bf16.msra.mxu0 %v2725_v6 }
  0xc6   : > { %2580 = vmatprep.subr.bf16.mxu0 %v2726_v7 }
  0xc9   : > { %2581 = vmatpush3.bf16.msra.mxu0 %v2726_v7 }
  0xca   : > { %2582 = vmatprep.subr.bf16.mxu0 %v2727_v8 }
  0xcd   : > { %2583 = vmatpush3.bf16.msra.mxu0 %v2727_v8 }
  0xce   : > { %2584 = vmatprep.subr.bf16.mxu0 %v2728_v9 }
  0xd1   : > { %2585 = vmatpush3.bf16.msra.mxu0 %v2728_v9 }
  0xd2   : > { %2586 = vmatprep.subr.bf16.mxu0 %v2729_v10 }
  0xd5   : > { %2587 = vmatpush3.bf16.msra.mxu0 %v2729_v10 }
  0xd6   : > { %2588 = vmatprep.subr.bf16.mxu0 %v2730_v11 }
  0xd9   : > { %2589 = vmatpush3.bf16.msra.mxu0 %v2730_v11 }
  0xdc   : > { %2591 = vmatmul.mubr.bf16.vlgmr.msra.gmra.mxu0 %v1574_v13  ;;  %v2281_v13 = vld [vmem:[%s3235_s6] ss:$0 sm:$0xff] }
 0x11c   : > { %v2432_v14 = vpop.f32.mrf.mxu0 }
 0x11d   : > { %v2452_v15 = vpop.f32.mrf.mxu1 }
 0x11e   : > { %v712_v16 = vpop.f32.mrf.mxu0  ;;  %v818_v35 = vadd.f32 %v2452_v15, %v2432_v14 }
 0x11f   : > { %v809_v17 = vpop.f32.mrf.mxu1 }
 0x120   : > { %v2433_v18 = vpop.f32.mrf.mxu0  ;;  %v810_v38 = vadd.f32 %v809_v17, %v712_v16 }
 0x121   : > { %v2453_v19 = vpop.f32.mrf.mxu1 }
 0x122   : > { %v715_v20 = vpop.f32.mrf.mxu0  ;;  %v821_v39 = vadd.f32 %v2453_v19, %v2433_v18 }
 0x123   : > { %v812_v22 = vpop.f32.mrf.mxu1 }
 0x124   : > { %v813_v42 = vadd.f32 %v812_v22, %v715_v20 }
 0x13c   : > { %v2472_v21 = vpop.f32.mrf.mxu0 }
 0x13d   : > { %v2492_v24 = vpop.f32.mrf.mxu1  ;;  %v946_v40 = vadd.f32 %v2472_v21, %v818_v35 }
 0x13e   : > { %v929_v23 = vpop.f32.mrf.mxu0 }
 0x13f   : > { %v1053_v26 = vpop.f32.mrf.mxu1  ;;  %v944_v43 = vadd.f32 %v929_v23, %v810_v38  ;;  %v1070_v46 = vadd.f32 %v2492_v24, %v946_v40 }
 0x140   : > { %v2473_v25 = vpop.f32.mrf.mxu0 }
 0x141   : > { %v2493_v28 = vpop.f32.mrf.mxu1  ;;  %v947_v44 = vadd.f32 %v2473_v25, %v821_v39  ;;  %v1068_v50 = vadd.f32 %v1053_v26, %v944_v43 }
 0x142   : > { %v932_v27 = vpop.f32.mrf.mxu0 }
 0x143   : > { %v1056_v30 = vpop.f32.mrf.mxu1  ;;  %v945_v47 = vadd.f32 %v932_v27, %v813_v42  ;;  %v1071_v51 = vadd.f32 %v2493_v28, %v947_v44  ;;  %v2773_v27 = vmov 1.0  }
 0x145   : > { %v1069_v53 = vadd.f32 %v1056_v30, %v945_v47 }
 0x15c   : > { %v2512_v29 = vpop.f32.mrf.mxu0 }
 0x15d   : > { %v2532_v32 = vpop.f32.mrf.mxu1  ;;  %v1194_v52 = vadd.f32 %v2512_v29, %v1070_v46 }
 0x15e   : > { %v1177_v31 = vpop.f32.mrf.mxu0 }
 0x15f   : > { %v1301_v34 = vpop.f32.mrf.mxu1  ;;  %v1192_v54 = vadd.f32 %v1177_v31, %v1068_v50  ;;  %v1318_v58 = vadd.f32 %v2532_v32, %v1194_v52 }
 0x160   : > { %v2513_v33 = vpop.f32.mrf.mxu0 }
 0x161   : > { %v2533_v37 = vpop.f32.mrf.mxu1  ;;  %v1195_v55 = vadd.f32 %v2513_v33, %v1071_v51  ;;  %v1316_v60 = vadd.f32 %v1301_v34, %v1192_v54 }
 0x162   : > { %v1180_v36 = vpop.f32.mrf.mxu0 }
 0x163   : > { %v1304_v45 = vpop.f32.mrf.mxu1  ;;  %v1193_v59 = vadd.f32 %v1180_v36, %v1069_v53  ;;  %v1319_v61 = vadd.f32 %v2533_v37, %v1195_v55 }
 0x165   : > { %v1317_v2 = vadd.f32 %v1304_v45, %v1193_v59 }
 0x17c   : > { %v2552_v41 = vpop.f32.mrf.mxu0 }
 0x17d   : > { %v2572_v49 = vpop.f32.mrf.mxu1  ;;  %v1443_v62 = vadd.f32 %v2552_v41, %v1318_v58 }
 0x17e   : > { %v1426_v48 = vpop.f32.mrf.mxu0 }
 0x17f   : > { %v1550_v57 = vpop.f32.mrf.mxu1  ;;  %v1441_v3 = vadd.f32 %v1426_v48, %v1316_v60  ;;  %v1567_v6 = vadd.f32 %v2572_v49, %v1443_v62 }
 0x180   : > { %v2553_v56 = vpop.f32.mrf.mxu0 }
 0x181   : > { %v2573_v1 = vpop.f32.mrf.mxu1  ;;  %v1444_v4 = vadd.f32 %v2553_v56, %v1319_v61  ;;  %v1565_v10 = vadd.f32 %v1550_v57, %v1441_v3 }
 0x182   : > { %v1429_v63 = vpop.f32.mrf.mxu0 }
 0x183   : > { %v1442_v7 = vadd.f32 %v1429_v63, %v1317_v2  ;;  %v1553_v8 = vpop.f32.mrf.mxu1  ;;  %v1568_v11 = vadd.f32 %v2573_v1, %v1444_v4 }
 0x185   : > { %v1566_v15 = vadd.f32 %v1553_v8, %v1442_v7 }
 0x19c   : > { %v2592_v5 = vpop.f32.mrf.mxu0 }
 0x19d   : > { %v1691_v12 = vadd.f32 %v2592_v5, %v1567_v6 }
 0x19e   : > { %v1674_v9 = vpop.f32.mrf.mxu0 }
 0x19f   : > { %v1689_v16 = vadd.f32 %v1674_v9, %v1565_v10  ;;  %v1702_v19 = vadd.f32 %v2281_v13, %v1691_v12 }
 0x1a0   : > { %v2593_v14 = vpop.f32.mrf.mxu0 }
 0x1a1   : > { %v1692_v17 = vadd.f32 %v2593_v14, %v1568_v11  ;;  %v1700_v22 = vadd.f32 %v2281_v13, %v1689_v16  ;;  %v1780_v28 = vmul.f32 %v1702_v19, %v1702_v19 }
 0x1a2   : > { %v1677_v18 = vpop.f32.mrf.mxu0 }
 0x1a3   : > { %v1703_v20 = vadd.f32 %v2281_v13, %v1692_v17  ;;  %v1690_v21 = vadd.f32 %v1677_v18, %v1566_v15  ;;  %v1778_v30 = vmul.f32 %v1700_v22, %v1700_v22 }
 0x1a5   : > { %v2310_v23 = vpack.c.bf16 %v1703_v20, %v1702_v19  ;;  %v1701_v24 = vadd.f32 %v2281_v13, %v1690_v21  ;;  %2595 = vmatpush3.msra.mxu1 %v1703_v20  ;;  %v1781_v26 = vmul.f32 %v1703_v20, %v1703_v20 }
 0x1a6   : > { %2596 = vmatprep.subr.mxu1 %v2771_v0 }
 0x1a7   : > { %2313 = vst [vmem:[%s2900_s20 + $0x8] sm:$0xff] %v2310_v23   ;;  %v2305_v25 = vpack.c.bf16 %v1701_v24, %v1700_v22  ;;  %2597 = vmatpush3.msra.mxu1 %v1702_v19  ;;  %v1779_v29 = vmul.f32 %v1701_v24, %v1701_v24 }
 0x1a8   : > { %2598 = vmatprep.subr.mxu1 %v2771_v0 }
 0x1a9   : > { %2306 = vst [vmem:[%s2900_s20] sm:$0xff] %v2305_v25   ;;  %2599 = vmatpush3.msra.mxu1 %v1701_v24 }
 0x1aa   : > { %2600 = vmatprep.subr.mxu1 %v2771_v0 }
 0x1ab   : > { %2601 = vmatpush3.msra.mxu1 %v1700_v22 }
 0x1ac   : > { %2603 = vmatmul.mubr.msk.f32.vlgmr.msra.gmra.mxu1 %vm1704_vm1, %v2773_v27  ;;  %2605 = vmatprep.subr.mxu1 %v2771_v0 }
 0x1ad   : > { %2606 = vmatpush3.msra.mxu1 %v1781_v26  ;;  %2613 = vmatprep.mubr.msk.f32.mxu1 %vm2772_vm0, %v2771_v0 }
 0x1ae   : > { %2607 = vmatprep.subr.mxu1 %v2771_v0 }
 0x1af   : > { %2608 = vmatpush3.msra.mxu1 %v1780_v28 }
 0x1b0   : > { %2609 = vmatprep.subr.mxu1 %v2771_v0 }
 0x1b1   : > { %2610 = vmatpush3.msra.mxu1 %v1779_v29 }
 0x1b2   : > { %2611 = vmatprep.subr.mxu1 %v2771_v0 }
 0x1b3   : > { %2612 = vmatpush3.msra.mxu1 %v1778_v30 }
 0x1b4   : > { %2614 = vmatmul.mubr.msk.f32.vlgmr.msra.gmra.mxu1 %vm1704_vm1, %v2773_v27 }
 0x26c   : > { %v1774_v31 = vpop.f32.mrf.mxu1 }
 0x26e   : > { %v2604_v32 = vpop.f32.mrf.mxu1 }
 0x274   : > { %v1848_v33 = vpop.f32.mrf.mxu1 }
 0x275   : > { %v1853_v34 = vrot.slane %v1848_v33, 7 }
 0x276   : > { %v2615_v35 = vpop.f32.mrf.mxu1 }
 0x277   : > { %v1856_v36 = vsel %vm1855_vm2, %v1774_v31, %v1853_v34 }
 0x278   : > { %1857 = vst [vmem:[%s2914_s13] sm:$0x3] %v1856_v36 }
 0x279 PF: > { %s19_s9 = sadd.s32 1, %s2769_s9   ;;  %s3241_s27 = smov %s2761_s29 }
 0x27a   : > { %p16_p13 = scmp.ge.s32.totalorder %s19_s9, 6   ;;  %s3242_s28 = smov %s2765_s30 }
 0x27b   : > { %s3243_s29 = smov %s3246_s10  ;;  %s3244_s30 = smov %s3250_s11 }
 0x27c   :  { %18 = sbr.rel (!%p16_p13) target bundleno = 3 (0x3), region = 115 }

</bundles_post_ra>
